<compile_context>
chip_gen: v6e
topology: v6e:2x2x1
jax: 0.10.0
libtpu: 0.0.40
codegen_flags: <defaults>
</compile_context>

<pallas_src>
import functools

import jax
import jax.numpy as jnp
from jax.experimental import pallas as pl
from jax.experimental.pallas import tpu as pltpu


# ----------------------------- kernel ---------------------------------------

def _shift(x, s, masks, Lp):
    """out[..., i] = x[..., i + s] (zero outside [0, Lp)).  `s` static int."""
    if s == 0:
        return x
    xs = pltpu.roll(x, shift=(-s) % Lp, axis=x.ndim - 1)   # XLU rotate (free slot)
    return jnp.where(masks[s], xs, 0.0)                    # hoisted (1,1,Lp) mask


def _conv_same(x, w_ref, b_ref, relu, masks, Lp):
    """'same'-padded 1-D correlation over a whole batch block (VPU path).

    x:     (BB, Cin, Lp) f32
    w_ref: (K, Cin, Cout, Lp) f32  (tap-major, lane-pre-broadcast weight planes)
    b_ref: (Cout, Lp) f32          (lane-pre-broadcast bias)
    returns (BB, Cout, Lp) f32
    """
    K, Cin = w_ref.shape[0], w_ref.shape[1]
    p = (K - 1) // 2
    parts = []
    for j in range(K):                        # static unroll over kernel taps
        xs = _shift(x, j - p, masks, Lp)      # (BB, Cin, Lp) shifted window
        acc = None
        for ci in range(Cin):                 # static unroll over in-channels
            # (Cout, Lp) * (BB, 1, Lp) -> (BB, Cout, Lp): full-vreg vmul, the
            # weight plane broadcasts along batch/sublane for free.
            t = w_ref[j, ci, :, :] * xs[:, ci:ci + 1, :]
            acc = t if acc is None else acc + t
        parts.append(acc)                     # independent per-tap partials
    out = parts[0]
    for t in parts[1:]:
        out = out + t
    out = out + b_ref[...]
    if relu:
        out = jnp.maximum(out, 0.0)
    return out


def cnn_kernel(x_ref, w1, b1, w2, b2, w3, b3, w4, b4, o_ref, *, l_valid=None):
    Lp = x_ref.shape[-1]
    K = w1.shape[0]
    p = (K - 1) // 2

    # Hoisted shift masks: one iota, one compare per nonzero shift.
    idx = jax.lax.broadcasted_iota(jnp.int32, (1, 1, Lp), 2)
    masks = {}
    for s in range(-p, p + 1):
        if s != 0:
            masks[s] = (idx < (Lp - s)) if s > 0 else (idx >= (-s))
    valid = None
    if l_valid is not None and l_valid < Lp:
        valid = idx < l_valid                 # re-zero lane padding per layer

    x = x_ref[...].astype(jnp.float32)                          # (BB, Cin, Lp)
    h = _conv_same(x, w1, b1, True, masks, Lp)    # Conv1d + folded BN1 (+Dropout=id) + ReLU
    if valid is not None:
        h = jnp.where(valid, h, 0.0)
    h = _conv_same(h, w2, b2, True, masks, Lp)    # Conv1d + ReLU
    if valid is not None:
        h = jnp.where(valid, h, 0.0)
    h = _conv_same(h, w3, b3, True, masks, Lp)    # ConvT1 (as conv) + folded BN2 + ReLU
    if valid is not None:
        h = jnp.where(valid, h, 0.0)
    h = _conv_same(h, w4, b4, False, masks, Lp)   # ConvT2 (as conv)
    o_ref[...] = h.astype(o_ref.dtype)


# ----------------------------- wrapper ---------------------------------------

def _num_tensorcores():
    """Best-effort TensorCore count of the local chip (1 on v5e/v6e, 2 on v7x)."""
    try:
        info = pltpu.get_tpu_info()
        for attr in ("num_cores", "num_tensorcores", "tensorcores_per_chip",
                     "cores_per_chip", "core_count"):
            v = getattr(info, attr, None)
            if isinstance(v, int) and v > 0:
                return v
    except Exception:
        pass
    return 1   # safe default: no redundant grid steps on single-TC chips


def cnn_forward(x, params, batch_block=None, num_cores=None):
    B, Cin, L = x.shape
    K = params[0].shape[0]
    assert K % 2 == 1, "only odd kernel_size matches PyTorch 'same'/ConvT padding"
    assert (K - 1) // 2 < L, "kernel half-width must be smaller than L"
    Cout = params[6].shape[2]

    if num_cores is None:
        num_cores = _num_tensorcores()
    if batch_block is None:
        # One grid step per TensorCore; cap the batch block at 8 rows so the
        # ~(K+2)*BB live vregs per layer stay inside the 64-entry vreg file.
        batch_block = min(max(1, pl.cdiv(B, num_cores)), 8)
    nblk = pl.cdiv(B, batch_block)
    Bp = nblk * batch_block

    # Lane-dense L (multiple of 128) so output stores are unmasked vst; the
    # padded columns are re-zeroed inside the kernel after each intermediate
    # layer so 'same' edge semantics are preserved exactly.
    Lp = ((L + 127) // 128) * 128
    if Bp != B or Lp != L:
        x = jnp.pad(x, ((0, Bp - B), (0, 0), (0, Lp - L)))

    # Pre-broadcast weights/biases along the lane dim (grid-invariant, DMA'd
    # once): removes every per-(tap, cin) in-kernel lane splat from the
    # VALU-bound inner loop.  Costs only ~100 KB of extra weight VMEM here.
    params_b = tuple(jnp.broadcast_to(p_, p_.shape[:-1] + (Lp,)) for p_ in params)

    # TODO(synk): for very large BB*L, tile L (multiple of 512) with a
    # (K-1)//2 halo per layer and set vmem_limit_bytes explicitly (v7x has
    # 64 MiB physical / 32 MiB scoped, v5e scoped default is only 16 MiB);
    # full-L blocks are well under 1 MiB at the sizes used here.
    in_specs = [pl.BlockSpec((batch_block, Cin, Lp), lambda i: (i, 0, 0))]
    for prm in params_b:
        # grid-invariant params: constant index_map -> fetched once.
        in_specs.append(pl.BlockSpec(prm.shape, lambda i, n=prm.ndim: (0,) * n))

    kernel = functools.partial(cnn_kernel, l_valid=(L if Lp != L else None))

    out = pl.pallas_call(
        kernel,
        out_shape=jax.ShapeDtypeStruct((Bp, Cout, Lp), x.dtype),
        grid=(nblk,),
        in_specs=in_specs,
        out_specs=pl.BlockSpec((batch_block, Cout, Lp), lambda i: (i, 0, 0)),
        compiler_params=pltpu.CompilerParams(
            dimension_semantics=("parallel",)),
    )(x, *params_b)
    return out[:B, :, :L]


# ------------------------- parameter construction ----------------------------

def _pack_w(w_oik):
    """(Cout, Cin, K) -> (K, Cin, Cout, 1): tap-major planes (lane-broadcast later)."""
    return jnp.transpose(w_oik, (2, 1, 0))[..., None]


def make_params(key, input_size, output_size, kernel_size):
    """Deterministic synthetic parameters matching the PyTorch module shapes
    (eval mode: BatchNorm folded into the preceding conv; ConvTranspose1d
    with stride=1, padding=(k-1)//2, output_padding=0 rewritten as Conv1d)."""
    assert kernel_size % 2 == 1, "only odd kernel_size matches PyTorch 'same' padding"
    k = kernel_size
    eps = 1e-5
    keys = jax.random.split(key, 16)

    def uni(kk, shape, fan_in):
        bound = 1.0 / jnp.sqrt(jnp.float32(fan_in))
        return jax.random.uniform(kk, shape, jnp.float32, -bound, bound)

    # --- encoder: Conv1d(input_size, 7, k, padding='same') -------------------
    w1 = uni(keys[0], (7, input_size, k), input_size * k)
    b1 = uni(keys[1], (7,), input_size * k)
    # BatchNorm1d(7), eval mode (running stats), folded into conv1
    g1 = 1.0 + 0.1 * jax.random.normal(keys[2], (7,), jnp.float32)
    be1 = 0.1 * jax.random.normal(keys[3], (7,), jnp.float32)
    rm1 = 0.1 * jax.random.normal(keys[4], (7,), jnp.float32)
    rv1 = 1.0 + 0.1 * jax.random.uniform(keys[5], (7,), jnp.float32)
    s1 = g1 / jnp.sqrt(rv1 + eps)
    w1f = w1 * s1[:, None, None]
    b1f = (b1 - rm1) * s1 + be1

    # --- encoder: Conv1d(7, 5, k, padding='same') -----------------------------
    w2 = uni(keys[6], (5, 7, k), 7 * k)
    b2 = uni(keys[7], (5,), 7 * k)

    # --- decoder: ConvTranspose1d(5, 7, k, padding=(k-1)//2) ------------------
    wt3 = uni(keys[8], (5, 7, k), 7 * k)          # PyTorch convT weight: (in, out, k)
    bt3 = uni(keys[9], (7,), 7 * k)
    # equivalent 'same' Conv1d weight: Wc[o,i,m] = Wt[i,o,k-1-m]
    w3 = jnp.transpose(jnp.flip(wt3, axis=2), (1, 0, 2))   # (7, 5, k)
    # BatchNorm1d(7), eval mode (running stats), folded in
    g2 = 1.0 + 0.1 * jax.random.normal(keys[10], (7,), jnp.float32)
    be2 = 0.1 * jax.random.normal(keys[11], (7,), jnp.float32)
    rm2 = 0.1 * jax.random.normal(keys[12], (7,), jnp.float32)
    rv2 = 1.0 + 0.1 * jax.random.uniform(keys[13], (7,), jnp.float32)
    s2 = g2 / jnp.sqrt(rv2 + eps)
    w3f = w3 * s2[:, None, None]
    b3f = (bt3 - rm2) * s2 + be2

    # --- decoder: ConvTranspose1d(7, output_size, k, padding=(k-1)//2) --------
    wt4 = uni(keys[14], (7, output_size, k), output_size * k)
    bt4 = uni(keys[15], (output_size,), output_size * k)
    w4 = jnp.transpose(jnp.flip(wt4, axis=2), (1, 0, 2))   # (output_size, 7, k)

    # weights packed tap-major (K, Cin, Cout, 1); biases as (Cout, 1)
    return (
        _pack_w(w1f), b1f.reshape(-1, 1),
        _pack_w(w2), b2.reshape(-1, 1),
        _pack_w(w3f), b3f.reshape(-1, 1),
        _pack_w(w4), bt4.reshape(-1, 1),
    )


# ----------------------------- reference --------------------------------------

def ref_forward(x, params):
    """Pure-JAX reference (lax.conv) on the same folded parameters."""
    def unpack(wp):  # (K, Cin, Cout, 1) -> (Cout, Cin, K)
        return jnp.transpose(wp[..., 0], (2, 1, 0))

    def layer(h, wp, bp, relu):
        w = unpack(wp)
        p = (w.shape[2] - 1) // 2
        y = jax.lax.conv_general_dilated(
            h, w, window_strides=(1,), padding=[(p, p)],
            dimension_numbers=("NCH", "OIH", "NCH"))
        y = y + bp[None, :, :]
        return jnp.maximum(y, 0.0) if relu else y

    w1, b1, w2, b2, w3, b3, w4, b4 = params
    h = layer(x, w1, b1, True)
    h = layer(h, w2, b2, True)
    h = layer(h, w3, b3, True)
    return layer(h, w4, b4, False)


# ----------------------------- main ------------------------------------------

if __name__ == "__main__":
    # TODO(synk): train-mode Dropout / batch-statistics BatchNorm not modeled
    # (inference semantics only).
    input_size, output_size, kernel_size = 4, 4, 3
    B, L = 2, 128

    key = jax.random.PRNGKey(0)
    kx, kp = jax.random.split(key)
    x = jax.random.normal(kx, (B, input_size, L), jnp.float32)
    params = make_params(kp, input_size, output_size, kernel_size)

    y = cnn_forward(x, params)
    jax.block_until_ready(y)
    assert y.shape == (B, output_size, L) and y.dtype == jnp.float32

    y_ref = ref_forward(x, params)
    err = float(jnp.max(jnp.abs(y - y_ref)))
    assert jnp.allclose(y, y_ref, atol=1e-4, rtol=1e-4), err
    print("KERNEL_OK")
</pallas_src>

<mosaic_0001>
module attributes {stable_mosaic.version = 11 : i64} {
  func.func @cnn_kernel(%arg0: i32, %arg1: memref<2x4x128xf32, #tpu.memory_space<vmem>>, %arg2: memref<3x4x7x128xf32, #tpu.memory_space<vmem>>, %arg3: memref<7x128xf32, #tpu.memory_space<vmem>>, %arg4: memref<3x7x5x128xf32, #tpu.memory_space<vmem>>, %arg5: memref<5x128xf32, #tpu.memory_space<vmem>>, %arg6: memref<3x5x7x128xf32, #tpu.memory_space<vmem>>, %arg7: memref<7x128xf32, #tpu.memory_space<vmem>>, %arg8: memref<3x7x4x128xf32, #tpu.memory_space<vmem>>, %arg9: memref<4x128xf32, #tpu.memory_space<vmem>>, %arg10: memref<2x4x128xf32, #tpu.memory_space<vmem>>) attributes {dimension_semantics = [#tpu.dimension_semantics<parallel>], iteration_bounds = array<i64: 1>, scalar_prefetch = 0 : i64, scratch_operands = 0 : i64, tpu.core_type = #tpu.core_type<tc>, window_params = [{transform_indices = @transform_0, window_bounds = array<i64: 2, 4, 128>}, {pipeline_mode = #tpu.pipeline_mode<synchronous>, transform_indices = @transform_1, window_bounds = array<i64: 3, 4, 7, 128>}, {pipeline_mode = #tpu.pipeline_mode<synchronous>, transform_indices = @transform_2, window_bounds = array<i64: 7, 128>}, {pipeline_mode = #tpu.pipeline_mode<synchronous>, transform_indices = @transform_3, window_bounds = array<i64: 3, 7, 5, 128>}, {pipeline_mode = #tpu.pipeline_mode<synchronous>, transform_indices = @transform_4, window_bounds = array<i64: 5, 128>}, {pipeline_mode = #tpu.pipeline_mode<synchronous>, transform_indices = @transform_5, window_bounds = array<i64: 3, 5, 7, 128>}, {pipeline_mode = #tpu.pipeline_mode<synchronous>, transform_indices = @transform_6, window_bounds = array<i64: 7, 128>}, {pipeline_mode = #tpu.pipeline_mode<synchronous>, transform_indices = @transform_7, window_bounds = array<i64: 3, 7, 4, 128>}, {pipeline_mode = #tpu.pipeline_mode<synchronous>, transform_indices = @transform_8, window_bounds = array<i64: 4, 128>}, {transform_indices = @transform_9, window_bounds = array<i64: 2, 4, 128>}]} {
    %0 = tpu.iota {dimensions = array<i32: 2>} : vector<1x1x128xi32>
    %c1_i32 = arith.constant 1 : i32
    %1 = vector.broadcast %c1_i32 : i32 to vector<1x1x128xi32>
    %2 = arith.cmpi sge, %0, %1 : vector<1x1x128xi32>
    %c127_i32 = arith.constant 127 : i32
    %3 = vector.broadcast %c127_i32 : i32 to vector<1x1x128xi32>
    %4 = arith.cmpi slt, %0, %3 : vector<1x1x128xi32>
    %c0 = arith.constant 0 : index
    %c0_0 = arith.constant 0 : index
    %c0_1 = arith.constant 0 : index
    %5 = vector.load %arg1[%c0, %c0_0, %c0_1] : memref<2x4x128xf32, #tpu.memory_space<vmem>>, vector<2x4x128xf32>
    %c1_i32_2 = arith.constant 1 : i32
    %6 = tpu.dynamic_rotate %5 by %c1_i32_2 dim 2 : vector<2x4x128xf32>, i32 -> vector<2x4x128xf32>
    %cst = arith.constant 0.000000e+00 : f32
    %7 = vector.shape_cast %2 : vector<1x1x128xi1> to vector<1x1x128xi1>
    %8 = vector.broadcast %7 : vector<1x1x128xi1> to vector<2x4x128xi1>
    %9 = vector.broadcast %cst : f32 to vector<2x4x128xf32>
    %10 = arith.select %8, %6, %9 : vector<2x4x128xi1>, vector<2x4x128xf32>
    %c0_3 = arith.constant 0 : index
    %c0_4 = arith.constant 0 : index
    %c0_5 = arith.constant 0 : index
    %c0_6 = arith.constant 0 : index
    %11 = vector.load %arg2[%c0_3, %c0_4, %c0_5, %c0_6] : memref<3x4x7x128xf32, #tpu.memory_space<vmem>>, vector<1x1x7x128xf32>
    %12 = vector.shape_cast %11 : vector<1x1x7x128xf32> to vector<7x128xf32>
    %13 = vector.extract_strided_slice %10 {offsets = [0, 0, 0], sizes = [2, 1, 128], strides = [1, 1, 1]} : vector<2x4x128xf32> to vector<2x1x128xf32>
    %14 = vector.shape_cast %12 : vector<7x128xf32> to vector<1x7x128xf32>
    %15 = vector.broadcast %14 : vector<1x7x128xf32> to vector<2x7x128xf32>
    %16 = vector.broadcast %13 : vector<2x1x128xf32> to vector<2x7x128xf32>
    %17 = arith.mulf %15, %16 : vector<2x7x128xf32>
    %c0_7 = arith.constant 0 : index
    %c1 = arith.constant 1 : index
    %c0_8 = arith.constant 0 : index
    %c0_9 = arith.constant 0 : index
    %18 = vector.load %arg2[%c0_7, %c1, %c0_8, %c0_9] : memref<3x4x7x128xf32, #tpu.memory_space<vmem>>, vector<1x1x7x128xf32>
    %19 = vector.shape_cast %18 : vector<1x1x7x128xf32> to vector<7x128xf32>
    %20 = vector.extract_strided_slice %10 {offsets = [0, 1, 0], sizes = [2, 1, 128], strides = [1, 1, 1]} : vector<2x4x128xf32> to vector<2x1x128xf32>
    %21 = vector.shape_cast %19 : vector<7x128xf32> to vector<1x7x128xf32>
    %22 = vector.broadcast %21 : vector<1x7x128xf32> to vector<2x7x128xf32>
    %23 = vector.broadcast %20 : vector<2x1x128xf32> to vector<2x7x128xf32>
    %24 = arith.mulf %22, %23 : vector<2x7x128xf32>
    %25 = arith.addf %17, %24 : vector<2x7x128xf32>
    %c0_10 = arith.constant 0 : index
    %c2 = arith.constant 2 : index
    %c0_11 = arith.constant 0 : index
    %c0_12 = arith.constant 0 : index
    %26 = vector.load %arg2[%c0_10, %c2, %c0_11, %c0_12] : memref<3x4x7x128xf32, #tpu.memory_space<vmem>>, vector<1x1x7x128xf32>
    %27 = vector.shape_cast %26 : vector<1x1x7x128xf32> to vector<7x128xf32>
    %28 = vector.extract_strided_slice %10 {offsets = [0, 2, 0], sizes = [2, 1, 128], strides = [1, 1, 1]} : vector<2x4x128xf32> to vector<2x1x128xf32>
    %29 = vector.shape_cast %27 : vector<7x128xf32> to vector<1x7x128xf32>
    %30 = vector.broadcast %29 : vector<1x7x128xf32> to vector<2x7x128xf32>
    %31 = vector.broadcast %28 : vector<2x1x128xf32> to vector<2x7x128xf32>
    %32 = arith.mulf %30, %31 : vector<2x7x128xf32>
    %33 = arith.addf %25, %32 : vector<2x7x128xf32>
    %c0_13 = arith.constant 0 : index
    %c3 = arith.constant 3 : index
    %c0_14 = arith.constant 0 : index
    %c0_15 = arith.constant 0 : index
    %34 = vector.load %arg2[%c0_13, %c3, %c0_14, %c0_15] : memref<3x4x7x128xf32, #tpu.memory_space<vmem>>, vector<1x1x7x128xf32>
    %35 = vector.shape_cast %34 : vector<1x1x7x128xf32> to vector<7x128xf32>
    %36 = vector.extract_strided_slice %10 {offsets = [0, 3, 0], sizes = [2, 1, 128], strides = [1, 1, 1]} : vector<2x4x128xf32> to vector<2x1x128xf32>
    %37 = vector.shape_cast %35 : vector<7x128xf32> to vector<1x7x128xf32>
    %38 = vector.broadcast %37 : vector<1x7x128xf32> to vector<2x7x128xf32>
    %39 = vector.broadcast %36 : vector<2x1x128xf32> to vector<2x7x128xf32>
    %40 = arith.mulf %38, %39 : vector<2x7x128xf32>
    %41 = arith.addf %33, %40 : vector<2x7x128xf32>
    %c1_16 = arith.constant 1 : index
    %c0_17 = arith.constant 0 : index
    %c0_18 = arith.constant 0 : index
    %c0_19 = arith.constant 0 : index
    %42 = vector.load %arg2[%c1_16, %c0_17, %c0_18, %c0_19] : memref<3x4x7x128xf32, #tpu.memory_space<vmem>>, vector<1x1x7x128xf32>
    %43 = vector.shape_cast %42 : vector<1x1x7x128xf32> to vector<7x128xf32>
    %44 = vector.extract_strided_slice %5 {offsets = [0, 0, 0], sizes = [2, 1, 128], strides = [1, 1, 1]} : vector<2x4x128xf32> to vector<2x1x128xf32>
    %45 = vector.shape_cast %43 : vector<7x128xf32> to vector<1x7x128xf32>
    %46 = vector.broadcast %45 : vector<1x7x128xf32> to vector<2x7x128xf32>
    %47 = vector.broadcast %44 : vector<2x1x128xf32> to vector<2x7x128xf32>
    %48 = arith.mulf %46, %47 : vector<2x7x128xf32>
    %c1_20 = arith.constant 1 : index
    %c1_21 = arith.constant 1 : index
    %c0_22 = arith.constant 0 : index
    %c0_23 = arith.constant 0 : index
    %49 = vector.load %arg2[%c1_20, %c1_21, %c0_22, %c0_23] : memref<3x4x7x128xf32, #tpu.memory_space<vmem>>, vector<1x1x7x128xf32>
    %50 = vector.shape_cast %49 : vector<1x1x7x128xf32> to vector<7x128xf32>
    %51 = vector.extract_strided_slice %5 {offsets = [0, 1, 0], sizes = [2, 1, 128], strides = [1, 1, 1]} : vector<2x4x128xf32> to vector<2x1x128xf32>
    %52 = vector.shape_cast %50 : vector<7x128xf32> to vector<1x7x128xf32>
    %53 = vector.broadcast %52 : vector<1x7x128xf32> to vector<2x7x128xf32>
    %54 = vector.broadcast %51 : vector<2x1x128xf32> to vector<2x7x128xf32>
    %55 = arith.mulf %53, %54 : vector<2x7x128xf32>
    %56 = arith.addf %48, %55 : vector<2x7x128xf32>
    %c1_24 = arith.constant 1 : index
    %c2_25 = arith.constant 2 : index
    %c0_26 = arith.constant 0 : index
    %c0_27 = arith.constant 0 : index
    %57 = vector.load %arg2[%c1_24, %c2_25, %c0_26, %c0_27] : memref<3x4x7x128xf32, #tpu.memory_space<vmem>>, vector<1x1x7x128xf32>
    %58 = vector.shape_cast %57 : vector<1x1x7x128xf32> to vector<7x128xf32>
    %59 = vector.extract_strided_slice %5 {offsets = [0, 2, 0], sizes = [2, 1, 128], strides = [1, 1, 1]} : vector<2x4x128xf32> to vector<2x1x128xf32>
    %60 = vector.shape_cast %58 : vector<7x128xf32> to vector<1x7x128xf32>
    %61 = vector.broadcast %60 : vector<1x7x128xf32> to vector<2x7x128xf32>
    %62 = vector.broadcast %59 : vector<2x1x128xf32> to vector<2x7x128xf32>
    %63 = arith.mulf %61, %62 : vector<2x7x128xf32>
    %64 = arith.addf %56, %63 : vector<2x7x128xf32>
    %c1_28 = arith.constant 1 : index
    %c3_29 = arith.constant 3 : index
    %c0_30 = arith.constant 0 : index
    %c0_31 = arith.constant 0 : index
    %65 = vector.load %arg2[%c1_28, %c3_29, %c0_30, %c0_31] : memref<3x4x7x128xf32, #tpu.memory_space<vmem>>, vector<1x1x7x128xf32>
    %66 = vector.shape_cast %65 : vector<1x1x7x128xf32> to vector<7x128xf32>
    %67 = vector.extract_strided_slice %5 {offsets = [0, 3, 0], sizes = [2, 1, 128], strides = [1, 1, 1]} : vector<2x4x128xf32> to vector<2x1x128xf32>
    %68 = vector.shape_cast %66 : vector<7x128xf32> to vector<1x7x128xf32>
    %69 = vector.broadcast %68 : vector<1x7x128xf32> to vector<2x7x128xf32>
    %70 = vector.broadcast %67 : vector<2x1x128xf32> to vector<2x7x128xf32>
    %71 = arith.mulf %69, %70 : vector<2x7x128xf32>
    %72 = arith.addf %64, %71 : vector<2x7x128xf32>
    %c127_i32_32 = arith.constant 127 : i32
    %73 = tpu.dynamic_rotate %5 by %c127_i32_32 dim 2 : vector<2x4x128xf32>, i32 -> vector<2x4x128xf32>
    %cst_33 = arith.constant 0.000000e+00 : f32
    %74 = vector.shape_cast %4 : vector<1x1x128xi1> to vector<1x1x128xi1>
    %75 = vector.broadcast %74 : vector<1x1x128xi1> to vector<2x4x128xi1>
    %76 = vector.broadcast %cst_33 : f32 to vector<2x4x128xf32>
    %77 = arith.select %75, %73, %76 : vector<2x4x128xi1>, vector<2x4x128xf32>
    %c2_34 = arith.constant 2 : index
    %c0_35 = arith.constant 0 : index
    %c0_36 = arith.constant 0 : index
    %c0_37 = arith.constant 0 : index
    %78 = vector.load %arg2[%c2_34, %c0_35, %c0_36, %c0_37] : memref<3x4x7x128xf32, #tpu.memory_space<vmem>>, vector<1x1x7x128xf32>
    %79 = vector.shape_cast %78 : vector<1x1x7x128xf32> to vector<7x128xf32>
    %80 = vector.extract_strided_slice %77 {offsets = [0, 0, 0], sizes = [2, 1, 128], strides = [1, 1, 1]} : vector<2x4x128xf32> to vector<2x1x128xf32>
    %81 = vector.shape_cast %79 : vector<7x128xf32> to vector<1x7x128xf32>
    %82 = vector.broadcast %81 : vector<1x7x128xf32> to vector<2x7x128xf32>
    %83 = vector.broadcast %80 : vector<2x1x128xf32> to vector<2x7x128xf32>
    %84 = arith.mulf %82, %83 : vector<2x7x128xf32>
    %c2_38 = arith.constant 2 : index
    %c1_39 = arith.constant 1 : index
    %c0_40 = arith.constant 0 : index
    %c0_41 = arith.constant 0 : index
    %85 = vector.load %arg2[%c2_38, %c1_39, %c0_40, %c0_41] : memref<3x4x7x128xf32, #tpu.memory_space<vmem>>, vector<1x1x7x128xf32>
    %86 = vector.shape_cast %85 : vector<1x1x7x128xf32> to vector<7x128xf32>
    %87 = vector.extract_strided_slice %77 {offsets = [0, 1, 0], sizes = [2, 1, 128], strides = [1, 1, 1]} : vector<2x4x128xf32> to vector<2x1x128xf32>
    %88 = vector.shape_cast %86 : vector<7x128xf32> to vector<1x7x128xf32>
    %89 = vector.broadcast %88 : vector<1x7x128xf32> to vector<2x7x128xf32>
    %90 = vector.broadcast %87 : vector<2x1x128xf32> to vector<2x7x128xf32>
    %91 = arith.mulf %89, %90 : vector<2x7x128xf32>
    %92 = arith.addf %84, %91 : vector<2x7x128xf32>
    %c2_42 = arith.constant 2 : index
    %c2_43 = arith.constant 2 : index
    %c0_44 = arith.constant 0 : index
    %c0_45 = arith.constant 0 : index
    %93 = vector.load %arg2[%c2_42, %c2_43, %c0_44, %c0_45] : memref<3x4x7x128xf32, #tpu.memory_space<vmem>>, vector<1x1x7x128xf32>
    %94 = vector.shape_cast %93 : vector<1x1x7x128xf32> to vector<7x128xf32>
    %95 = vector.extract_strided_slice %77 {offsets = [0, 2, 0], sizes = [2, 1, 128], strides = [1, 1, 1]} : vector<2x4x128xf32> to vector<2x1x128xf32>
    %96 = vector.shape_cast %94 : vector<7x128xf32> to vector<1x7x128xf32>
    %97 = vector.broadcast %96 : vector<1x7x128xf32> to vector<2x7x128xf32>
    %98 = vector.broadcast %95 : vector<2x1x128xf32> to vector<2x7x128xf32>
    %99 = arith.mulf %97, %98 : vector<2x7x128xf32>
    %100 = arith.addf %92, %99 : vector<2x7x128xf32>
    %c2_46 = arith.constant 2 : index
    %c3_47 = arith.constant 3 : index
    %c0_48 = arith.constant 0 : index
    %c0_49 = arith.constant 0 : index
    %101 = vector.load %arg2[%c2_46, %c3_47, %c0_48, %c0_49] : memref<3x4x7x128xf32, #tpu.memory_space<vmem>>, vector<1x1x7x128xf32>
    %102 = vector.shape_cast %101 : vector<1x1x7x128xf32> to vector<7x128xf32>
    %103 = vector.extract_strided_slice %77 {offsets = [0, 3, 0], sizes = [2, 1, 128], strides = [1, 1, 1]} : vector<2x4x128xf32> to vector<2x1x128xf32>
    %104 = vector.shape_cast %102 : vector<7x128xf32> to vector<1x7x128xf32>
    %105 = vector.broadcast %104 : vector<1x7x128xf32> to vector<2x7x128xf32>
    %106 = vector.broadcast %103 : vector<2x1x128xf32> to vector<2x7x128xf32>
    %107 = arith.mulf %105, %106 : vector<2x7x128xf32>
    %108 = arith.addf %100, %107 : vector<2x7x128xf32>
    %109 = arith.addf %41, %72 : vector<2x7x128xf32>
    %110 = arith.addf %109, %108 : vector<2x7x128xf32>
    %c0_50 = arith.constant 0 : index
    %c0_51 = arith.constant 0 : index
    %111 = vector.load %arg3[%c0_50, %c0_51] : memref<7x128xf32, #tpu.memory_space<vmem>>, vector<7x128xf32>
    %112 = vector.shape_cast %111 : vector<7x128xf32> to vector<1x7x128xf32>
    %113 = vector.broadcast %112 : vector<1x7x128xf32> to vector<2x7x128xf32>
    %114 = arith.addf %110, %113 : vector<2x7x128xf32>
    %cst_52 = arith.constant 0.000000e+00 : f32
    %115 = vector.broadcast %cst_52 : f32 to vector<2x7x128xf32>
    %116 = arith.maximumf %114, %115 : vector<2x7x128xf32>
    %c1_i32_53 = arith.constant 1 : i32
    %117 = tpu.dynamic_rotate %116 by %c1_i32_53 dim 2 : vector<2x7x128xf32>, i32 -> vector<2x7x128xf32>
    %cst_54 = arith.constant 0.000000e+00 : f32
    %118 = vector.shape_cast %2 : vector<1x1x128xi1> to vector<1x1x128xi1>
    %119 = vector.broadcast %118 : vector<1x1x128xi1> to vector<2x7x128xi1>
    %120 = vector.broadcast %cst_54 : f32 to vector<2x7x128xf32>
    %121 = arith.select %119, %117, %120 : vector<2x7x128xi1>, vector<2x7x128xf32>
    %c0_55 = arith.constant 0 : index
    %c0_56 = arith.constant 0 : index
    %c0_57 = arith.constant 0 : index
    %c0_58 = arith.constant 0 : index
    %122 = vector.load %arg4[%c0_55, %c0_56, %c0_57, %c0_58] : memref<3x7x5x128xf32, #tpu.memory_space<vmem>>, vector<1x1x5x128xf32>
    %123 = vector.shape_cast %122 : vector<1x1x5x128xf32> to vector<5x128xf32>
    %124 = vector.extract_strided_slice %121 {offsets = [0, 0, 0], sizes = [2, 1, 128], strides = [1, 1, 1]} : vector<2x7x128xf32> to vector<2x1x128xf32>
    %125 = vector.shape_cast %123 : vector<5x128xf32> to vector<1x5x128xf32>
    %126 = vector.broadcast %125 : vector<1x5x128xf32> to vector<2x5x128xf32>
    %127 = vector.broadcast %124 : vector<2x1x128xf32> to vector<2x5x128xf32>
    %128 = arith.mulf %126, %127 : vector<2x5x128xf32>
    %c0_59 = arith.constant 0 : index
    %c1_60 = arith.constant 1 : index
    %c0_61 = arith.constant 0 : index
    %c0_62 = arith.constant 0 : index
    %129 = vector.load %arg4[%c0_59, %c1_60, %c0_61, %c0_62] : memref<3x7x5x128xf32, #tpu.memory_space<vmem>>, vector<1x1x5x128xf32>
    %130 = vector.shape_cast %129 : vector<1x1x5x128xf32> to vector<5x128xf32>
    %131 = vector.extract_strided_slice %121 {offsets = [0, 1, 0], sizes = [2, 1, 128], strides = [1, 1, 1]} : vector<2x7x128xf32> to vector<2x1x128xf32>
    %132 = vector.shape_cast %130 : vector<5x128xf32> to vector<1x5x128xf32>
    %133 = vector.broadcast %132 : vector<1x5x128xf32> to vector<2x5x128xf32>
    %134 = vector.broadcast %131 : vector<2x1x128xf32> to vector<2x5x128xf32>
    %135 = arith.mulf %133, %134 : vector<2x5x128xf32>
    %136 = arith.addf %128, %135 : vector<2x5x128xf32>
    %c0_63 = arith.constant 0 : index
    %c2_64 = arith.constant 2 : index
    %c0_65 = arith.constant 0 : index
    %c0_66 = arith.constant 0 : index
    %137 = vector.load %arg4[%c0_63, %c2_64, %c0_65, %c0_66] : memref<3x7x5x128xf32, #tpu.memory_space<vmem>>, vector<1x1x5x128xf32>
    %138 = vector.shape_cast %137 : vector<1x1x5x128xf32> to vector<5x128xf32>
    %139 = vector.extract_strided_slice %121 {offsets = [0, 2, 0], sizes = [2, 1, 128], strides = [1, 1, 1]} : vector<2x7x128xf32> to vector<2x1x128xf32>
    %140 = vector.shape_cast %138 : vector<5x128xf32> to vector<1x5x128xf32>
    %141 = vector.broadcast %140 : vector<1x5x128xf32> to vector<2x5x128xf32>
    %142 = vector.broadcast %139 : vector<2x1x128xf32> to vector<2x5x128xf32>
    %143 = arith.mulf %141, %142 : vector<2x5x128xf32>
    %144 = arith.addf %136, %143 : vector<2x5x128xf32>
    %c0_67 = arith.constant 0 : index
    %c3_68 = arith.constant 3 : index
    %c0_69 = arith.constant 0 : index
    %c0_70 = arith.constant 0 : index
    %145 = vector.load %arg4[%c0_67, %c3_68, %c0_69, %c0_70] : memref<3x7x5x128xf32, #tpu.memory_space<vmem>>, vector<1x1x5x128xf32>
    %146 = vector.shape_cast %145 : vector<1x1x5x128xf32> to vector<5x128xf32>
    %147 = vector.extract_strided_slice %121 {offsets = [0, 3, 0], sizes = [2, 1, 128], strides = [1, 1, 1]} : vector<2x7x128xf32> to vector<2x1x128xf32>
    %148 = vector.shape_cast %146 : vector<5x128xf32> to vector<1x5x128xf32>
    %149 = vector.broadcast %148 : vector<1x5x128xf32> to vector<2x5x128xf32>
    %150 = vector.broadcast %147 : vector<2x1x128xf32> to vector<2x5x128xf32>
    %151 = arith.mulf %149, %150 : vector<2x5x128xf32>
    %152 = arith.addf %144, %151 : vector<2x5x128xf32>
    %c0_71 = arith.constant 0 : index
    %c4 = arith.constant 4 : index
    %c0_72 = arith.constant 0 : index
    %c0_73 = arith.constant 0 : index
    %153 = vector.load %arg4[%c0_71, %c4, %c0_72, %c0_73] : memref<3x7x5x128xf32, #tpu.memory_space<vmem>>, vector<1x1x5x128xf32>
    %154 = vector.shape_cast %153 : vector<1x1x5x128xf32> to vector<5x128xf32>
    %155 = vector.extract_strided_slice %121 {offsets = [0, 4, 0], sizes = [2, 1, 128], strides = [1, 1, 1]} : vector<2x7x128xf32> to vector<2x1x128xf32>
    %156 = vector.shape_cast %154 : vector<5x128xf32> to vector<1x5x128xf32>
    %157 = vector.broadcast %156 : vector<1x5x128xf32> to vector<2x5x128xf32>
    %158 = vector.broadcast %155 : vector<2x1x128xf32> to vector<2x5x128xf32>
    %159 = arith.mulf %157, %158 : vector<2x5x128xf32>
    %160 = arith.addf %152, %159 : vector<2x5x128xf32>
    %c0_74 = arith.constant 0 : index
    %c5 = arith.constant 5 : index
    %c0_75 = arith.constant 0 : index
    %c0_76 = arith.constant 0 : index
    %161 = vector.load %arg4[%c0_74, %c5, %c0_75, %c0_76] : memref<3x7x5x128xf32, #tpu.memory_space<vmem>>, vector<1x1x5x128xf32>
    %162 = vector.shape_cast %161 : vector<1x1x5x128xf32> to vector<5x128xf32>
    %163 = vector.extract_strided_slice %121 {offsets = [0, 5, 0], sizes = [2, 1, 128], strides = [1, 1, 1]} : vector<2x7x128xf32> to vector<2x1x128xf32>
    %164 = vector.shape_cast %162 : vector<5x128xf32> to vector<1x5x128xf32>
    %165 = vector.broadcast %164 : vector<1x5x128xf32> to vector<2x5x128xf32>
    %166 = vector.broadcast %163 : vector<2x1x128xf32> to vector<2x5x128xf32>
    %167 = arith.mulf %165, %166 : vector<2x5x128xf32>
    %168 = arith.addf %160, %167 : vector<2x5x128xf32>
    %c0_77 = arith.constant 0 : index
    %c6 = arith.constant 6 : index
    %c0_78 = arith.constant 0 : index
    %c0_79 = arith.constant 0 : index
    %169 = vector.load %arg4[%c0_77, %c6, %c0_78, %c0_79] : memref<3x7x5x128xf32, #tpu.memory_space<vmem>>, vector<1x1x5x128xf32>
    %170 = vector.shape_cast %169 : vector<1x1x5x128xf32> to vector<5x128xf32>
    %171 = vector.extract_strided_slice %121 {offsets = [0, 6, 0], sizes = [2, 1, 128], strides = [1, 1, 1]} : vector<2x7x128xf32> to vector<2x1x128xf32>
    %172 = vector.shape_cast %170 : vector<5x128xf32> to vector<1x5x128xf32>
    %173 = vector.broadcast %172 : vector<1x5x128xf32> to vector<2x5x128xf32>
    %174 = vector.broadcast %171 : vector<2x1x128xf32> to vector<2x5x128xf32>
    %175 = arith.mulf %173, %174 : vector<2x5x128xf32>
    %176 = arith.addf %168, %175 : vector<2x5x128xf32>
    %c1_80 = arith.constant 1 : index
    %c0_81 = arith.constant 0 : index
    %c0_82 = arith.constant 0 : index
    %c0_83 = arith.constant 0 : index
    %177 = vector.load %arg4[%c1_80, %c0_81, %c0_82, %c0_83] : memref<3x7x5x128xf32, #tpu.memory_space<vmem>>, vector<1x1x5x128xf32>
    %178 = vector.shape_cast %177 : vector<1x1x5x128xf32> to vector<5x128xf32>
    %179 = vector.extract_strided_slice %116 {offsets = [0, 0, 0], sizes = [2, 1, 128], strides = [1, 1, 1]} : vector<2x7x128xf32> to vector<2x1x128xf32>
    %180 = vector.shape_cast %178 : vector<5x128xf32> to vector<1x5x128xf32>
    %181 = vector.broadcast %180 : vector<1x5x128xf32> to vector<2x5x128xf32>
    %182 = vector.broadcast %179 : vector<2x1x128xf32> to vector<2x5x128xf32>
    %183 = arith.mulf %181, %182 : vector<2x5x128xf32>
    %c1_84 = arith.constant 1 : index
    %c1_85 = arith.constant 1 : index
    %c0_86 = arith.constant 0 : index
    %c0_87 = arith.constant 0 : index
    %184 = vector.load %arg4[%c1_84, %c1_85, %c0_86, %c0_87] : memref<3x7x5x128xf32, #tpu.memory_space<vmem>>, vector<1x1x5x128xf32>
    %185 = vector.shape_cast %184 : vector<1x1x5x128xf32> to vector<5x128xf32>
    %186 = vector.extract_strided_slice %116 {offsets = [0, 1, 0], sizes = [2, 1, 128], strides = [1, 1, 1]} : vector<2x7x128xf32> to vector<2x1x128xf32>
    %187 = vector.shape_cast %185 : vector<5x128xf32> to vector<1x5x128xf32>
    %188 = vector.broadcast %187 : vector<1x5x128xf32> to vector<2x5x128xf32>
    %189 = vector.broadcast %186 : vector<2x1x128xf32> to vector<2x5x128xf32>
    %190 = arith.mulf %188, %189 : vector<2x5x128xf32>
    %191 = arith.addf %183, %190 : vector<2x5x128xf32>
    %c1_88 = arith.constant 1 : index
    %c2_89 = arith.constant 2 : index
    %c0_90 = arith.constant 0 : index
    %c0_91 = arith.constant 0 : index
    %192 = vector.load %arg4[%c1_88, %c2_89, %c0_90, %c0_91] : memref<3x7x5x128xf32, #tpu.memory_space<vmem>>, vector<1x1x5x128xf32>
    %193 = vector.shape_cast %192 : vector<1x1x5x128xf32> to vector<5x128xf32>
    %194 = vector.extract_strided_slice %116 {offsets = [0, 2, 0], sizes = [2, 1, 128], strides = [1, 1, 1]} : vector<2x7x128xf32> to vector<2x1x128xf32>
    %195 = vector.shape_cast %193 : vector<5x128xf32> to vector<1x5x128xf32>
    %196 = vector.broadcast %195 : vector<1x5x128xf32> to vector<2x5x128xf32>
    %197 = vector.broadcast %194 : vector<2x1x128xf32> to vector<2x5x128xf32>
    %198 = arith.mulf %196, %197 : vector<2x5x128xf32>
    %199 = arith.addf %191, %198 : vector<2x5x128xf32>
    %c1_92 = arith.constant 1 : index
    %c3_93 = arith.constant 3 : index
    %c0_94 = arith.constant 0 : index
    %c0_95 = arith.constant 0 : index
    %200 = vector.load %arg4[%c1_92, %c3_93, %c0_94, %c0_95] : memref<3x7x5x128xf32, #tpu.memory_space<vmem>>, vector<1x1x5x128xf32>
    %201 = vector.shape_cast %200 : vector<1x1x5x128xf32> to vector<5x128xf32>
    %202 = vector.extract_strided_slice %116 {offsets = [0, 3, 0], sizes = [2, 1, 128], strides = [1, 1, 1]} : vector<2x7x128xf32> to vector<2x1x128xf32>
    %203 = vector.shape_cast %201 : vector<5x128xf32> to vector<1x5x128xf32>
    %204 = vector.broadcast %203 : vector<1x5x128xf32> to vector<2x5x128xf32>
    %205 = vector.broadcast %202 : vector<2x1x128xf32> to vector<2x5x128xf32>
    %206 = arith.mulf %204, %205 : vector<2x5x128xf32>
    %207 = arith.addf %199, %206 : vector<2x5x128xf32>
    %c1_96 = arith.constant 1 : index
    %c4_97 = arith.constant 4 : index
    %c0_98 = arith.constant 0 : index
    %c0_99 = arith.constant 0 : index
    %208 = vector.load %arg4[%c1_96, %c4_97, %c0_98, %c0_99] : memref<3x7x5x128xf32, #tpu.memory_space<vmem>>, vector<1x1x5x128xf32>
    %209 = vector.shape_cast %208 : vector<1x1x5x128xf32> to vector<5x128xf32>
    %210 = vector.extract_strided_slice %116 {offsets = [0, 4, 0], sizes = [2, 1, 128], strides = [1, 1, 1]} : vector<2x7x128xf32> to vector<2x1x128xf32>
    %211 = vector.shape_cast %209 : vector<5x128xf32> to vector<1x5x128xf32>
    %212 = vector.broadcast %211 : vector<1x5x128xf32> to vector<2x5x128xf32>
    %213 = vector.broadcast %210 : vector<2x1x128xf32> to vector<2x5x128xf32>
    %214 = arith.mulf %212, %213 : vector<2x5x128xf32>
    %215 = arith.addf %207, %214 : vector<2x5x128xf32>
    %c1_100 = arith.constant 1 : index
    %c5_101 = arith.constant 5 : index
    %c0_102 = arith.constant 0 : index
    %c0_103 = arith.constant 0 : index
    %216 = vector.load %arg4[%c1_100, %c5_101, %c0_102, %c0_103] : memref<3x7x5x128xf32, #tpu.memory_space<vmem>>, vector<1x1x5x128xf32>
    %217 = vector.shape_cast %216 : vector<1x1x5x128xf32> to vector<5x128xf32>
    %218 = vector.extract_strided_slice %116 {offsets = [0, 5, 0], sizes = [2, 1, 128], strides = [1, 1, 1]} : vector<2x7x128xf32> to vector<2x1x128xf32>
    %219 = vector.shape_cast %217 : vector<5x128xf32> to vector<1x5x128xf32>
    %220 = vector.broadcast %219 : vector<1x5x128xf32> to vector<2x5x128xf32>
    %221 = vector.broadcast %218 : vector<2x1x128xf32> to vector<2x5x128xf32>
    %222 = arith.mulf %220, %221 : vector<2x5x128xf32>
    %223 = arith.addf %215, %222 : vector<2x5x128xf32>
    %c1_104 = arith.constant 1 : index
    %c6_105 = arith.constant 6 : index
    %c0_106 = arith.constant 0 : index
    %c0_107 = arith.constant 0 : index
    %224 = vector.load %arg4[%c1_104, %c6_105, %c0_106, %c0_107] : memref<3x7x5x128xf32, #tpu.memory_space<vmem>>, vector<1x1x5x128xf32>
    %225 = vector.shape_cast %224 : vector<1x1x5x128xf32> to vector<5x128xf32>
    %226 = vector.extract_strided_slice %116 {offsets = [0, 6, 0], sizes = [2, 1, 128], strides = [1, 1, 1]} : vector<2x7x128xf32> to vector<2x1x128xf32>
    %227 = vector.shape_cast %225 : vector<5x128xf32> to vector<1x5x128xf32>
    %228 = vector.broadcast %227 : vector<1x5x128xf32> to vector<2x5x128xf32>
    %229 = vector.broadcast %226 : vector<2x1x128xf32> to vector<2x5x128xf32>
    %230 = arith.mulf %228, %229 : vector<2x5x128xf32>
    %231 = arith.addf %223, %230 : vector<2x5x128xf32>
    %c127_i32_108 = arith.constant 127 : i32
    %232 = tpu.dynamic_rotate %116 by %c127_i32_108 dim 2 : vector<2x7x128xf32>, i32 -> vector<2x7x128xf32>
    %cst_109 = arith.constant 0.000000e+00 : f32
    %233 = vector.shape_cast %4 : vector<1x1x128xi1> to vector<1x1x128xi1>
    %234 = vector.broadcast %233 : vector<1x1x128xi1> to vector<2x7x128xi1>
    %235 = vector.broadcast %cst_109 : f32 to vector<2x7x128xf32>
    %236 = arith.select %234, %232, %235 : vector<2x7x128xi1>, vector<2x7x128xf32>
    %c2_110 = arith.constant 2 : index
    %c0_111 = arith.constant 0 : index
    %c0_112 = arith.constant 0 : index
    %c0_113 = arith.constant 0 : index
    %237 = vector.load %arg4[%c2_110, %c0_111, %c0_112, %c0_113] : memref<3x7x5x128xf32, #tpu.memory_space<vmem>>, vector<1x1x5x128xf32>
    %238 = vector.shape_cast %237 : vector<1x1x5x128xf32> to vector<5x128xf32>
    %239 = vector.extract_strided_slice %236 {offsets = [0, 0, 0], sizes = [2, 1, 128], strides = [1, 1, 1]} : vector<2x7x128xf32> to vector<2x1x128xf32>
    %240 = vector.shape_cast %238 : vector<5x128xf32> to vector<1x5x128xf32>
    %241 = vector.broadcast %240 : vector<1x5x128xf32> to vector<2x5x128xf32>
    %242 = vector.broadcast %239 : vector<2x1x128xf32> to vector<2x5x128xf32>
    %243 = arith.mulf %241, %242 : vector<2x5x128xf32>
    %c2_114 = arith.constant 2 : index
    %c1_115 = arith.constant 1 : index
    %c0_116 = arith.constant 0 : index
    %c0_117 = arith.constant 0 : index
    %244 = vector.load %arg4[%c2_114, %c1_115, %c0_116, %c0_117] : memref<3x7x5x128xf32, #tpu.memory_space<vmem>>, vector<1x1x5x128xf32>
    %245 = vector.shape_cast %244 : vector<1x1x5x128xf32> to vector<5x128xf32>
    %246 = vector.extract_strided_slice %236 {offsets = [0, 1, 0], sizes = [2, 1, 128], strides = [1, 1, 1]} : vector<2x7x128xf32> to vector<2x1x128xf32>
    %247 = vector.shape_cast %245 : vector<5x128xf32> to vector<1x5x128xf32>
    %248 = vector.broadcast %247 : vector<1x5x128xf32> to vector<2x5x128xf32>
    %249 = vector.broadcast %246 : vector<2x1x128xf32> to vector<2x5x128xf32>
    %250 = arith.mulf %248, %249 : vector<2x5x128xf32>
    %251 = arith.addf %243, %250 : vector<2x5x128xf32>
    %c2_118 = arith.constant 2 : index
    %c2_119 = arith.constant 2 : index
    %c0_120 = arith.constant 0 : index
    %c0_121 = arith.constant 0 : index
    %252 = vector.load %arg4[%c2_118, %c2_119, %c0_120, %c0_121] : memref<3x7x5x128xf32, #tpu.memory_space<vmem>>, vector<1x1x5x128xf32>
    %253 = vector.shape_cast %252 : vector<1x1x5x128xf32> to vector<5x128xf32>
    %254 = vector.extract_strided_slice %236 {offsets = [0, 2, 0], sizes = [2, 1, 128], strides = [1, 1, 1]} : vector<2x7x128xf32> to vector<2x1x128xf32>
    %255 = vector.shape_cast %253 : vector<5x128xf32> to vector<1x5x128xf32>
    %256 = vector.broadcast %255 : vector<1x5x128xf32> to vector<2x5x128xf32>
    %257 = vector.broadcast %254 : vector<2x1x128xf32> to vector<2x5x128xf32>
    %258 = arith.mulf %256, %257 : vector<2x5x128xf32>
    %259 = arith.addf %251, %258 : vector<2x5x128xf32>
    %c2_122 = arith.constant 2 : index
    %c3_123 = arith.constant 3 : index
    %c0_124 = arith.constant 0 : index
    %c0_125 = arith.constant 0 : index
    %260 = vector.load %arg4[%c2_122, %c3_123, %c0_124, %c0_125] : memref<3x7x5x128xf32, #tpu.memory_space<vmem>>, vector<1x1x5x128xf32>
    %261 = vector.shape_cast %260 : vector<1x1x5x128xf32> to vector<5x128xf32>
    %262 = vector.extract_strided_slice %236 {offsets = [0, 3, 0], sizes = [2, 1, 128], strides = [1, 1, 1]} : vector<2x7x128xf32> to vector<2x1x128xf32>
    %263 = vector.shape_cast %261 : vector<5x128xf32> to vector<1x5x128xf32>
    %264 = vector.broadcast %263 : vector<1x5x128xf32> to vector<2x5x128xf32>
    %265 = vector.broadcast %262 : vector<2x1x128xf32> to vector<2x5x128xf32>
    %266 = arith.mulf %264, %265 : vector<2x5x128xf32>
    %267 = arith.addf %259, %266 : vector<2x5x128xf32>
    %c2_126 = arith.constant 2 : index
    %c4_127 = arith.constant 4 : index
    %c0_128 = arith.constant 0 : index
    %c0_129 = arith.constant 0 : index
    %268 = vector.load %arg4[%c2_126, %c4_127, %c0_128, %c0_129] : memref<3x7x5x128xf32, #tpu.memory_space<vmem>>, vector<1x1x5x128xf32>
    %269 = vector.shape_cast %268 : vector<1x1x5x128xf32> to vector<5x128xf32>
    %270 = vector.extract_strided_slice %236 {offsets = [0, 4, 0], sizes = [2, 1, 128], strides = [1, 1, 1]} : vector<2x7x128xf32> to vector<2x1x128xf32>
    %271 = vector.shape_cast %269 : vector<5x128xf32> to vector<1x5x128xf32>
    %272 = vector.broadcast %271 : vector<1x5x128xf32> to vector<2x5x128xf32>
    %273 = vector.broadcast %270 : vector<2x1x128xf32> to vector<2x5x128xf32>
    %274 = arith.mulf %272, %273 : vector<2x5x128xf32>
    %275 = arith.addf %267, %274 : vector<2x5x128xf32>
    %c2_130 = arith.constant 2 : index
    %c5_131 = arith.constant 5 : index
    %c0_132 = arith.constant 0 : index
    %c0_133 = arith.constant 0 : index
    %276 = vector.load %arg4[%c2_130, %c5_131, %c0_132, %c0_133] : memref<3x7x5x128xf32, #tpu.memory_space<vmem>>, vector<1x1x5x128xf32>
    %277 = vector.shape_cast %276 : vector<1x1x5x128xf32> to vector<5x128xf32>
    %278 = vector.extract_strided_slice %236 {offsets = [0, 5, 0], sizes = [2, 1, 128], strides = [1, 1, 1]} : vector<2x7x128xf32> to vector<2x1x128xf32>
    %279 = vector.shape_cast %277 : vector<5x128xf32> to vector<1x5x128xf32>
    %280 = vector.broadcast %279 : vector<1x5x128xf32> to vector<2x5x128xf32>
    %281 = vector.broadcast %278 : vector<2x1x128xf32> to vector<2x5x128xf32>
    %282 = arith.mulf %280, %281 : vector<2x5x128xf32>
    %283 = arith.addf %275, %282 : vector<2x5x128xf32>
    %c2_134 = arith.constant 2 : index
    %c6_135 = arith.constant 6 : index
    %c0_136 = arith.constant 0 : index
    %c0_137 = arith.constant 0 : index
    %284 = vector.load %arg4[%c2_134, %c6_135, %c0_136, %c0_137] : memref<3x7x5x128xf32, #tpu.memory_space<vmem>>, vector<1x1x5x128xf32>
    %285 = vector.shape_cast %284 : vector<1x1x5x128xf32> to vector<5x128xf32>
    %286 = vector.extract_strided_slice %236 {offsets = [0, 6, 0], sizes = [2, 1, 128], strides = [1, 1, 1]} : vector<2x7x128xf32> to vector<2x1x128xf32>
    %287 = vector.shape_cast %285 : vector<5x128xf32> to vector<1x5x128xf32>
    %288 = vector.broadcast %287 : vector<1x5x128xf32> to vector<2x5x128xf32>
    %289 = vector.broadcast %286 : vector<2x1x128xf32> to vector<2x5x128xf32>
    %290 = arith.mulf %288, %289 : vector<2x5x128xf32>
    %291 = arith.addf %283, %290 : vector<2x5x128xf32>
    %292 = arith.addf %176, %231 : vector<2x5x128xf32>
    %293 = arith.addf %292, %291 : vector<2x5x128xf32>
    %c0_138 = arith.constant 0 : index
    %c0_139 = arith.constant 0 : index
    %294 = vector.load %arg5[%c0_138, %c0_139] : memref<5x128xf32, #tpu.memory_space<vmem>>, vector<5x128xf32>
    %295 = vector.shape_cast %294 : vector<5x128xf32> to vector<1x5x128xf32>
    %296 = vector.broadcast %295 : vector<1x5x128xf32> to vector<2x5x128xf32>
    %297 = arith.addf %293, %296 : vector<2x5x128xf32>
    %cst_140 = arith.constant 0.000000e+00 : f32
    %298 = vector.broadcast %cst_140 : f32 to vector<2x5x128xf32>
    %299 = arith.maximumf %297, %298 : vector<2x5x128xf32>
    %c1_i32_141 = arith.constant 1 : i32
    %300 = tpu.dynamic_rotate %299 by %c1_i32_141 dim 2 : vector<2x5x128xf32>, i32 -> vector<2x5x128xf32>
    %cst_142 = arith.constant 0.000000e+00 : f32
    %301 = vector.shape_cast %2 : vector<1x1x128xi1> to vector<1x1x128xi1>
    %302 = vector.broadcast %301 : vector<1x1x128xi1> to vector<2x5x128xi1>
    %303 = vector.broadcast %cst_142 : f32 to vector<2x5x128xf32>
    %304 = arith.select %302, %300, %303 : vector<2x5x128xi1>, vector<2x5x128xf32>
    %c0_143 = arith.constant 0 : index
    %c0_144 = arith.constant 0 : index
    %c0_145 = arith.constant 0 : index
    %c0_146 = arith.constant 0 : index
    %305 = vector.load %arg6[%c0_143, %c0_144, %c0_145, %c0_146] : memref<3x5x7x128xf32, #tpu.memory_space<vmem>>, vector<1x1x7x128xf32>
    %306 = vector.shape_cast %305 : vector<1x1x7x128xf32> to vector<7x128xf32>
    %307 = vector.extract_strided_slice %304 {offsets = [0, 0, 0], sizes = [2, 1, 128], strides = [1, 1, 1]} : vector<2x5x128xf32> to vector<2x1x128xf32>
    %308 = vector.shape_cast %306 : vector<7x128xf32> to vector<1x7x128xf32>
    %309 = vector.broadcast %308 : vector<1x7x128xf32> to vector<2x7x128xf32>
    %310 = vector.broadcast %307 : vector<2x1x128xf32> to vector<2x7x128xf32>
    %311 = arith.mulf %309, %310 : vector<2x7x128xf32>
    %c0_147 = arith.constant 0 : index
    %c1_148 = arith.constant 1 : index
    %c0_149 = arith.constant 0 : index
    %c0_150 = arith.constant 0 : index
    %312 = vector.load %arg6[%c0_147, %c1_148, %c0_149, %c0_150] : memref<3x5x7x128xf32, #tpu.memory_space<vmem>>, vector<1x1x7x128xf32>
    %313 = vector.shape_cast %312 : vector<1x1x7x128xf32> to vector<7x128xf32>
    %314 = vector.extract_strided_slice %304 {offsets = [0, 1, 0], sizes = [2, 1, 128], strides = [1, 1, 1]} : vector<2x5x128xf32> to vector<2x1x128xf32>
    %315 = vector.shape_cast %313 : vector<7x128xf32> to vector<1x7x128xf32>
    %316 = vector.broadcast %315 : vector<1x7x128xf32> to vector<2x7x128xf32>
    %317 = vector.broadcast %314 : vector<2x1x128xf32> to vector<2x7x128xf32>
    %318 = arith.mulf %316, %317 : vector<2x7x128xf32>
    %319 = arith.addf %311, %318 : vector<2x7x128xf32>
    %c0_151 = arith.constant 0 : index
    %c2_152 = arith.constant 2 : index
    %c0_153 = arith.constant 0 : index
    %c0_154 = arith.constant 0 : index
    %320 = vector.load %arg6[%c0_151, %c2_152, %c0_153, %c0_154] : memref<3x5x7x128xf32, #tpu.memory_space<vmem>>, vector<1x1x7x128xf32>
    %321 = vector.shape_cast %320 : vector<1x1x7x128xf32> to vector<7x128xf32>
    %322 = vector.extract_strided_slice %304 {offsets = [0, 2, 0], sizes = [2, 1, 128], strides = [1, 1, 1]} : vector<2x5x128xf32> to vector<2x1x128xf32>
    %323 = vector.shape_cast %321 : vector<7x128xf32> to vector<1x7x128xf32>
    %324 = vector.broadcast %323 : vector<1x7x128xf32> to vector<2x7x128xf32>
    %325 = vector.broadcast %322 : vector<2x1x128xf32> to vector<2x7x128xf32>
    %326 = arith.mulf %324, %325 : vector<2x7x128xf32>
    %327 = arith.addf %319, %326 : vector<2x7x128xf32>
    %c0_155 = arith.constant 0 : index
    %c3_156 = arith.constant 3 : index
    %c0_157 = arith.constant 0 : index
    %c0_158 = arith.constant 0 : index
    %328 = vector.load %arg6[%c0_155, %c3_156, %c0_157, %c0_158] : memref<3x5x7x128xf32, #tpu.memory_space<vmem>>, vector<1x1x7x128xf32>
    %329 = vector.shape_cast %328 : vector<1x1x7x128xf32> to vector<7x128xf32>
    %330 = vector.extract_strided_slice %304 {offsets = [0, 3, 0], sizes = [2, 1, 128], strides = [1, 1, 1]} : vector<2x5x128xf32> to vector<2x1x128xf32>
    %331 = vector.shape_cast %329 : vector<7x128xf32> to vector<1x7x128xf32>
    %332 = vector.broadcast %331 : vector<1x7x128xf32> to vector<2x7x128xf32>
    %333 = vector.broadcast %330 : vector<2x1x128xf32> to vector<2x7x128xf32>
    %334 = arith.mulf %332, %333 : vector<2x7x128xf32>
    %335 = arith.addf %327, %334 : vector<2x7x128xf32>
    %c0_159 = arith.constant 0 : index
    %c4_160 = arith.constant 4 : index
    %c0_161 = arith.constant 0 : index
    %c0_162 = arith.constant 0 : index
    %336 = vector.load %arg6[%c0_159, %c4_160, %c0_161, %c0_162] : memref<3x5x7x128xf32, #tpu.memory_space<vmem>>, vector<1x1x7x128xf32>
    %337 = vector.shape_cast %336 : vector<1x1x7x128xf32> to vector<7x128xf32>
    %338 = vector.extract_strided_slice %304 {offsets = [0, 4, 0], sizes = [2, 1, 128], strides = [1, 1, 1]} : vector<2x5x128xf32> to vector<2x1x128xf32>
    %339 = vector.shape_cast %337 : vector<7x128xf32> to vector<1x7x128xf32>
    %340 = vector.broadcast %339 : vector<1x7x128xf32> to vector<2x7x128xf32>
    %341 = vector.broadcast %338 : vector<2x1x128xf32> to vector<2x7x128xf32>
    %342 = arith.mulf %340, %341 : vector<2x7x128xf32>
    %343 = arith.addf %335, %342 : vector<2x7x128xf32>
    %c1_163 = arith.constant 1 : index
    %c0_164 = arith.constant 0 : index
    %c0_165 = arith.constant 0 : index
    %c0_166 = arith.constant 0 : index
    %344 = vector.load %arg6[%c1_163, %c0_164, %c0_165, %c0_166] : memref<3x5x7x128xf32, #tpu.memory_space<vmem>>, vector<1x1x7x128xf32>
    %345 = vector.shape_cast %344 : vector<1x1x7x128xf32> to vector<7x128xf32>
    %346 = vector.extract_strided_slice %299 {offsets = [0, 0, 0], sizes = [2, 1, 128], strides = [1, 1, 1]} : vector<2x5x128xf32> to vector<2x1x128xf32>
    %347 = vector.shape_cast %345 : vector<7x128xf32> to vector<1x7x128xf32>
    %348 = vector.broadcast %347 : vector<1x7x128xf32> to vector<2x7x128xf32>
    %349 = vector.broadcast %346 : vector<2x1x128xf32> to vector<2x7x128xf32>
    %350 = arith.mulf %348, %349 : vector<2x7x128xf32>
    %c1_167 = arith.constant 1 : index
    %c1_168 = arith.constant 1 : index
    %c0_169 = arith.constant 0 : index
    %c0_170 = arith.constant 0 : index
    %351 = vector.load %arg6[%c1_167, %c1_168, %c0_169, %c0_170] : memref<3x5x7x128xf32, #tpu.memory_space<vmem>>, vector<1x1x7x128xf32>
    %352 = vector.shape_cast %351 : vector<1x1x7x128xf32> to vector<7x128xf32>
    %353 = vector.extract_strided_slice %299 {offsets = [0, 1, 0], sizes = [2, 1, 128], strides = [1, 1, 1]} : vector<2x5x128xf32> to vector<2x1x128xf32>
    %354 = vector.shape_cast %352 : vector<7x128xf32> to vector<1x7x128xf32>
    %355 = vector.broadcast %354 : vector<1x7x128xf32> to vector<2x7x128xf32>
    %356 = vector.broadcast %353 : vector<2x1x128xf32> to vector<2x7x128xf32>
    %357 = arith.mulf %355, %356 : vector<2x7x128xf32>
    %358 = arith.addf %350, %357 : vector<2x7x128xf32>
    %c1_171 = arith.constant 1 : index
    %c2_172 = arith.constant 2 : index
    %c0_173 = arith.constant 0 : index
    %c0_174 = arith.constant 0 : index
    %359 = vector.load %arg6[%c1_171, %c2_172, %c0_173, %c0_174] : memref<3x5x7x128xf32, #tpu.memory_space<vmem>>, vector<1x1x7x128xf32>
    %360 = vector.shape_cast %359 : vector<1x1x7x128xf32> to vector<7x128xf32>
    %361 = vector.extract_strided_slice %299 {offsets = [0, 2, 0], sizes = [2, 1, 128], strides = [1, 1, 1]} : vector<2x5x128xf32> to vector<2x1x128xf32>
    %362 = vector.shape_cast %360 : vector<7x128xf32> to vector<1x7x128xf32>
    %363 = vector.broadcast %362 : vector<1x7x128xf32> to vector<2x7x128xf32>
    %364 = vector.broadcast %361 : vector<2x1x128xf32> to vector<2x7x128xf32>
    %365 = arith.mulf %363, %364 : vector<2x7x128xf32>
    %366 = arith.addf %358, %365 : vector<2x7x128xf32>
    %c1_175 = arith.constant 1 : index
    %c3_176 = arith.constant 3 : index
    %c0_177 = arith.constant 0 : index
    %c0_178 = arith.constant 0 : index
    %367 = vector.load %arg6[%c1_175, %c3_176, %c0_177, %c0_178] : memref<3x5x7x128xf32, #tpu.memory_space<vmem>>, vector<1x1x7x128xf32>
    %368 = vector.shape_cast %367 : vector<1x1x7x128xf32> to vector<7x128xf32>
    %369 = vector.extract_strided_slice %299 {offsets = [0, 3, 0], sizes = [2, 1, 128], strides = [1, 1, 1]} : vector<2x5x128xf32> to vector<2x1x128xf32>
    %370 = vector.shape_cast %368 : vector<7x128xf32> to vector<1x7x128xf32>
    %371 = vector.broadcast %370 : vector<1x7x128xf32> to vector<2x7x128xf32>
    %372 = vector.broadcast %369 : vector<2x1x128xf32> to vector<2x7x128xf32>
    %373 = arith.mulf %371, %372 : vector<2x7x128xf32>
    %374 = arith.addf %366, %373 : vector<2x7x128xf32>
    %c1_179 = arith.constant 1 : index
    %c4_180 = arith.constant 4 : index
    %c0_181 = arith.constant 0 : index
    %c0_182 = arith.constant 0 : index
    %375 = vector.load %arg6[%c1_179, %c4_180, %c0_181, %c0_182] : memref<3x5x7x128xf32, #tpu.memory_space<vmem>>, vector<1x1x7x128xf32>
    %376 = vector.shape_cast %375 : vector<1x1x7x128xf32> to vector<7x128xf32>
    %377 = vector.extract_strided_slice %299 {offsets = [0, 4, 0], sizes = [2, 1, 128], strides = [1, 1, 1]} : vector<2x5x128xf32> to vector<2x1x128xf32>
    %378 = vector.shape_cast %376 : vector<7x128xf32> to vector<1x7x128xf32>
    %379 = vector.broadcast %378 : vector<1x7x128xf32> to vector<2x7x128xf32>
    %380 = vector.broadcast %377 : vector<2x1x128xf32> to vector<2x7x128xf32>
    %381 = arith.mulf %379, %380 : vector<2x7x128xf32>
    %382 = arith.addf %374, %381 : vector<2x7x128xf32>
    %c127_i32_183 = arith.constant 127 : i32
    %383 = tpu.dynamic_rotate %299 by %c127_i32_183 dim 2 : vector<2x5x128xf32>, i32 -> vector<2x5x128xf32>
    %cst_184 = arith.constant 0.000000e+00 : f32
    %384 = vector.shape_cast %4 : vector<1x1x128xi1> to vector<1x1x128xi1>
    %385 = vector.broadcast %384 : vector<1x1x128xi1> to vector<2x5x128xi1>
    %386 = vector.broadcast %cst_184 : f32 to vector<2x5x128xf32>
    %387 = arith.select %385, %383, %386 : vector<2x5x128xi1>, vector<2x5x128xf32>
    %c2_185 = arith.constant 2 : index
    %c0_186 = arith.constant 0 : index
    %c0_187 = arith.constant 0 : index
    %c0_188 = arith.constant 0 : index
    %388 = vector.load %arg6[%c2_185, %c0_186, %c0_187, %c0_188] : memref<3x5x7x128xf32, #tpu.memory_space<vmem>>, vector<1x1x7x128xf32>
    %389 = vector.shape_cast %388 : vector<1x1x7x128xf32> to vector<7x128xf32>
    %390 = vector.extract_strided_slice %387 {offsets = [0, 0, 0], sizes = [2, 1, 128], strides = [1, 1, 1]} : vector<2x5x128xf32> to vector<2x1x128xf32>
    %391 = vector.shape_cast %389 : vector<7x128xf32> to vector<1x7x128xf32>
    %392 = vector.broadcast %391 : vector<1x7x128xf32> to vector<2x7x128xf32>
    %393 = vector.broadcast %390 : vector<2x1x128xf32> to vector<2x7x128xf32>
    %394 = arith.mulf %392, %393 : vector<2x7x128xf32>
    %c2_189 = arith.constant 2 : index
    %c1_190 = arith.constant 1 : index
    %c0_191 = arith.constant 0 : index
    %c0_192 = arith.constant 0 : index
    %395 = vector.load %arg6[%c2_189, %c1_190, %c0_191, %c0_192] : memref<3x5x7x128xf32, #tpu.memory_space<vmem>>, vector<1x1x7x128xf32>
    %396 = vector.shape_cast %395 : vector<1x1x7x128xf32> to vector<7x128xf32>
    %397 = vector.extract_strided_slice %387 {offsets = [0, 1, 0], sizes = [2, 1, 128], strides = [1, 1, 1]} : vector<2x5x128xf32> to vector<2x1x128xf32>
    %398 = vector.shape_cast %396 : vector<7x128xf32> to vector<1x7x128xf32>
    %399 = vector.broadcast %398 : vector<1x7x128xf32> to vector<2x7x128xf32>
    %400 = vector.broadcast %397 : vector<2x1x128xf32> to vector<2x7x128xf32>
    %401 = arith.mulf %399, %400 : vector<2x7x128xf32>
    %402 = arith.addf %394, %401 : vector<2x7x128xf32>
    %c2_193 = arith.constant 2 : index
    %c2_194 = arith.constant 2 : index
    %c0_195 = arith.constant 0 : index
    %c0_196 = arith.constant 0 : index
    %403 = vector.load %arg6[%c2_193, %c2_194, %c0_195, %c0_196] : memref<3x5x7x128xf32, #tpu.memory_space<vmem>>, vector<1x1x7x128xf32>
    %404 = vector.shape_cast %403 : vector<1x1x7x128xf32> to vector<7x128xf32>
    %405 = vector.extract_strided_slice %387 {offsets = [0, 2, 0], sizes = [2, 1, 128], strides = [1, 1, 1]} : vector<2x5x128xf32> to vector<2x1x128xf32>
    %406 = vector.shape_cast %404 : vector<7x128xf32> to vector<1x7x128xf32>
    %407 = vector.broadcast %406 : vector<1x7x128xf32> to vector<2x7x128xf32>
    %408 = vector.broadcast %405 : vector<2x1x128xf32> to vector<2x7x128xf32>
    %409 = arith.mulf %407, %408 : vector<2x7x128xf32>
    %410 = arith.addf %402, %409 : vector<2x7x128xf32>
    %c2_197 = arith.constant 2 : index
    %c3_198 = arith.constant 3 : index
    %c0_199 = arith.constant 0 : index
    %c0_200 = arith.constant 0 : index
    %411 = vector.load %arg6[%c2_197, %c3_198, %c0_199, %c0_200] : memref<3x5x7x128xf32, #tpu.memory_space<vmem>>, vector<1x1x7x128xf32>
    %412 = vector.shape_cast %411 : vector<1x1x7x128xf32> to vector<7x128xf32>
    %413 = vector.extract_strided_slice %387 {offsets = [0, 3, 0], sizes = [2, 1, 128], strides = [1, 1, 1]} : vector<2x5x128xf32> to vector<2x1x128xf32>
    %414 = vector.shape_cast %412 : vector<7x128xf32> to vector<1x7x128xf32>
    %415 = vector.broadcast %414 : vector<1x7x128xf32> to vector<2x7x128xf32>
    %416 = vector.broadcast %413 : vector<2x1x128xf32> to vector<2x7x128xf32>
    %417 = arith.mulf %415, %416 : vector<2x7x128xf32>
    %418 = arith.addf %410, %417 : vector<2x7x128xf32>
    %c2_201 = arith.constant 2 : index
    %c4_202 = arith.constant 4 : index
    %c0_203 = arith.constant 0 : index
    %c0_204 = arith.constant 0 : index
    %419 = vector.load %arg6[%c2_201, %c4_202, %c0_203, %c0_204] : memref<3x5x7x128xf32, #tpu.memory_space<vmem>>, vector<1x1x7x128xf32>
    %420 = vector.shape_cast %419 : vector<1x1x7x128xf32> to vector<7x128xf32>
    %421 = vector.extract_strided_slice %387 {offsets = [0, 4, 0], sizes = [2, 1, 128], strides = [1, 1, 1]} : vector<2x5x128xf32> to vector<2x1x128xf32>
    %422 = vector.shape_cast %420 : vector<7x128xf32> to vector<1x7x128xf32>
    %423 = vector.broadcast %422 : vector<1x7x128xf32> to vector<2x7x128xf32>
    %424 = vector.broadcast %421 : vector<2x1x128xf32> to vector<2x7x128xf32>
    %425 = arith.mulf %423, %424 : vector<2x7x128xf32>
    %426 = arith.addf %418, %425 : vector<2x7x128xf32>
    %427 = arith.addf %343, %382 : vector<2x7x128xf32>
    %428 = arith.addf %427, %426 : vector<2x7x128xf32>
    %c0_205 = arith.constant 0 : index
    %c0_206 = arith.constant 0 : index
    %429 = vector.load %arg7[%c0_205, %c0_206] : memref<7x128xf32, #tpu.memory_space<vmem>>, vector<7x128xf32>
    %430 = vector.shape_cast %429 : vector<7x128xf32> to vector<1x7x128xf32>
    %431 = vector.broadcast %430 : vector<1x7x128xf32> to vector<2x7x128xf32>
    %432 = arith.addf %428, %431 : vector<2x7x128xf32>
    %cst_207 = arith.constant 0.000000e+00 : f32
    %433 = vector.broadcast %cst_207 : f32 to vector<2x7x128xf32>
    %434 = arith.maximumf %432, %433 : vector<2x7x128xf32>
    %c1_i32_208 = arith.constant 1 : i32
    %435 = tpu.dynamic_rotate %434 by %c1_i32_208 dim 2 : vector<2x7x128xf32>, i32 -> vector<2x7x128xf32>
    %cst_209 = arith.constant 0.000000e+00 : f32
    %436 = vector.shape_cast %2 : vector<1x1x128xi1> to vector<1x1x128xi1>
    %437 = vector.broadcast %436 : vector<1x1x128xi1> to vector<2x7x128xi1>
    %438 = vector.broadcast %cst_209 : f32 to vector<2x7x128xf32>
    %439 = arith.select %437, %435, %438 : vector<2x7x128xi1>, vector<2x7x128xf32>
    %c0_210 = arith.constant 0 : index
    %c0_211 = arith.constant 0 : index
    %c0_212 = arith.constant 0 : index
    %c0_213 = arith.constant 0 : index
    %440 = vector.load %arg8[%c0_210, %c0_211, %c0_212, %c0_213] : memref<3x7x4x128xf32, #tpu.memory_space<vmem>>, vector<1x1x4x128xf32>
    %441 = vector.shape_cast %440 : vector<1x1x4x128xf32> to vector<4x128xf32>
    %442 = vector.extract_strided_slice %439 {offsets = [0, 0, 0], sizes = [2, 1, 128], strides = [1, 1, 1]} : vector<2x7x128xf32> to vector<2x1x128xf32>
    %443 = vector.shape_cast %441 : vector<4x128xf32> to vector<1x4x128xf32>
    %444 = vector.broadcast %443 : vector<1x4x128xf32> to vector<2x4x128xf32>
    %445 = vector.broadcast %442 : vector<2x1x128xf32> to vector<2x4x128xf32>
    %446 = arith.mulf %444, %445 : vector<2x4x128xf32>
    %c0_214 = arith.constant 0 : index
    %c1_215 = arith.constant 1 : index
    %c0_216 = arith.constant 0 : index
    %c0_217 = arith.constant 0 : index
    %447 = vector.load %arg8[%c0_214, %c1_215, %c0_216, %c0_217] : memref<3x7x4x128xf32, #tpu.memory_space<vmem>>, vector<1x1x4x128xf32>
    %448 = vector.shape_cast %447 : vector<1x1x4x128xf32> to vector<4x128xf32>
    %449 = vector.extract_strided_slice %439 {offsets = [0, 1, 0], sizes = [2, 1, 128], strides = [1, 1, 1]} : vector<2x7x128xf32> to vector<2x1x128xf32>
    %450 = vector.shape_cast %448 : vector<4x128xf32> to vector<1x4x128xf32>
    %451 = vector.broadcast %450 : vector<1x4x128xf32> to vector<2x4x128xf32>
    %452 = vector.broadcast %449 : vector<2x1x128xf32> to vector<2x4x128xf32>
    %453 = arith.mulf %451, %452 : vector<2x4x128xf32>
    %454 = arith.addf %446, %453 : vector<2x4x128xf32>
    %c0_218 = arith.constant 0 : index
    %c2_219 = arith.constant 2 : index
    %c0_220 = arith.constant 0 : index
    %c0_221 = arith.constant 0 : index
    %455 = vector.load %arg8[%c0_218, %c2_219, %c0_220, %c0_221] : memref<3x7x4x128xf32, #tpu.memory_space<vmem>>, vector<1x1x4x128xf32>
    %456 = vector.shape_cast %455 : vector<1x1x4x128xf32> to vector<4x128xf32>
    %457 = vector.extract_strided_slice %439 {offsets = [0, 2, 0], sizes = [2, 1, 128], strides = [1, 1, 1]} : vector<2x7x128xf32> to vector<2x1x128xf32>
    %458 = vector.shape_cast %456 : vector<4x128xf32> to vector<1x4x128xf32>
    %459 = vector.broadcast %458 : vector<1x4x128xf32> to vector<2x4x128xf32>
    %460 = vector.broadcast %457 : vector<2x1x128xf32> to vector<2x4x128xf32>
    %461 = arith.mulf %459, %460 : vector<2x4x128xf32>
    %462 = arith.addf %454, %461 : vector<2x4x128xf32>
    %c0_222 = arith.constant 0 : index
    %c3_223 = arith.constant 3 : index
    %c0_224 = arith.constant 0 : index
    %c0_225 = arith.constant 0 : index
    %463 = vector.load %arg8[%c0_222, %c3_223, %c0_224, %c0_225] : memref<3x7x4x128xf32, #tpu.memory_space<vmem>>, vector<1x1x4x128xf32>
    %464 = vector.shape_cast %463 : vector<1x1x4x128xf32> to vector<4x128xf32>
    %465 = vector.extract_strided_slice %439 {offsets = [0, 3, 0], sizes = [2, 1, 128], strides = [1, 1, 1]} : vector<2x7x128xf32> to vector<2x1x128xf32>
    %466 = vector.shape_cast %464 : vector<4x128xf32> to vector<1x4x128xf32>
    %467 = vector.broadcast %466 : vector<1x4x128xf32> to vector<2x4x128xf32>
    %468 = vector.broadcast %465 : vector<2x1x128xf32> to vector<2x4x128xf32>
    %469 = arith.mulf %467, %468 : vector<2x4x128xf32>
    %470 = arith.addf %462, %469 : vector<2x4x128xf32>
    %c0_226 = arith.constant 0 : index
    %c4_227 = arith.constant 4 : index
    %c0_228 = arith.constant 0 : index
    %c0_229 = arith.constant 0 : index
    %471 = vector.load %arg8[%c0_226, %c4_227, %c0_228, %c0_229] : memref<3x7x4x128xf32, #tpu.memory_space<vmem>>, vector<1x1x4x128xf32>
    %472 = vector.shape_cast %471 : vector<1x1x4x128xf32> to vector<4x128xf32>
    %473 = vector.extract_strided_slice %439 {offsets = [0, 4, 0], sizes = [2, 1, 128], strides = [1, 1, 1]} : vector<2x7x128xf32> to vector<2x1x128xf32>
    %474 = vector.shape_cast %472 : vector<4x128xf32> to vector<1x4x128xf32>
    %475 = vector.broadcast %474 : vector<1x4x128xf32> to vector<2x4x128xf32>
    %476 = vector.broadcast %473 : vector<2x1x128xf32> to vector<2x4x128xf32>
    %477 = arith.mulf %475, %476 : vector<2x4x128xf32>
    %478 = arith.addf %470, %477 : vector<2x4x128xf32>
    %c0_230 = arith.constant 0 : index
    %c5_231 = arith.constant 5 : index
    %c0_232 = arith.constant 0 : index
    %c0_233 = arith.constant 0 : index
    %479 = vector.load %arg8[%c0_230, %c5_231, %c0_232, %c0_233] : memref<3x7x4x128xf32, #tpu.memory_space<vmem>>, vector<1x1x4x128xf32>
    %480 = vector.shape_cast %479 : vector<1x1x4x128xf32> to vector<4x128xf32>
    %481 = vector.extract_strided_slice %439 {offsets = [0, 5, 0], sizes = [2, 1, 128], strides = [1, 1, 1]} : vector<2x7x128xf32> to vector<2x1x128xf32>
    %482 = vector.shape_cast %480 : vector<4x128xf32> to vector<1x4x128xf32>
    %483 = vector.broadcast %482 : vector<1x4x128xf32> to vector<2x4x128xf32>
    %484 = vector.broadcast %481 : vector<2x1x128xf32> to vector<2x4x128xf32>
    %485 = arith.mulf %483, %484 : vector<2x4x128xf32>
    %486 = arith.addf %478, %485 : vector<2x4x128xf32>
    %c0_234 = arith.constant 0 : index
    %c6_235 = arith.constant 6 : index
    %c0_236 = arith.constant 0 : index
    %c0_237 = arith.constant 0 : index
    %487 = vector.load %arg8[%c0_234, %c6_235, %c0_236, %c0_237] : memref<3x7x4x128xf32, #tpu.memory_space<vmem>>, vector<1x1x4x128xf32>
    %488 = vector.shape_cast %487 : vector<1x1x4x128xf32> to vector<4x128xf32>
    %489 = vector.extract_strided_slice %439 {offsets = [0, 6, 0], sizes = [2, 1, 128], strides = [1, 1, 1]} : vector<2x7x128xf32> to vector<2x1x128xf32>
    %490 = vector.shape_cast %488 : vector<4x128xf32> to vector<1x4x128xf32>
    %491 = vector.broadcast %490 : vector<1x4x128xf32> to vector<2x4x128xf32>
    %492 = vector.broadcast %489 : vector<2x1x128xf32> to vector<2x4x128xf32>
    %493 = arith.mulf %491, %492 : vector<2x4x128xf32>
    %494 = arith.addf %486, %493 : vector<2x4x128xf32>
    %c1_238 = arith.constant 1 : index
    %c0_239 = arith.constant 0 : index
    %c0_240 = arith.constant 0 : index
    %c0_241 = arith.constant 0 : index
    %495 = vector.load %arg8[%c1_238, %c0_239, %c0_240, %c0_241] : memref<3x7x4x128xf32, #tpu.memory_space<vmem>>, vector<1x1x4x128xf32>
    %496 = vector.shape_cast %495 : vector<1x1x4x128xf32> to vector<4x128xf32>
    %497 = vector.extract_strided_slice %434 {offsets = [0, 0, 0], sizes = [2, 1, 128], strides = [1, 1, 1]} : vector<2x7x128xf32> to vector<2x1x128xf32>
    %498 = vector.shape_cast %496 : vector<4x128xf32> to vector<1x4x128xf32>
    %499 = vector.broadcast %498 : vector<1x4x128xf32> to vector<2x4x128xf32>
    %500 = vector.broadcast %497 : vector<2x1x128xf32> to vector<2x4x128xf32>
    %501 = arith.mulf %499, %500 : vector<2x4x128xf32>
    %c1_242 = arith.constant 1 : index
    %c1_243 = arith.constant 1 : index
    %c0_244 = arith.constant 0 : index
    %c0_245 = arith.constant 0 : index
    %502 = vector.load %arg8[%c1_242, %c1_243, %c0_244, %c0_245] : memref<3x7x4x128xf32, #tpu.memory_space<vmem>>, vector<1x1x4x128xf32>
    %503 = vector.shape_cast %502 : vector<1x1x4x128xf32> to vector<4x128xf32>
    %504 = vector.extract_strided_slice %434 {offsets = [0, 1, 0], sizes = [2, 1, 128], strides = [1, 1, 1]} : vector<2x7x128xf32> to vector<2x1x128xf32>
    %505 = vector.shape_cast %503 : vector<4x128xf32> to vector<1x4x128xf32>
    %506 = vector.broadcast %505 : vector<1x4x128xf32> to vector<2x4x128xf32>
    %507 = vector.broadcast %504 : vector<2x1x128xf32> to vector<2x4x128xf32>
    %508 = arith.mulf %506, %507 : vector<2x4x128xf32>
    %509 = arith.addf %501, %508 : vector<2x4x128xf32>
    %c1_246 = arith.constant 1 : index
    %c2_247 = arith.constant 2 : index
    %c0_248 = arith.constant 0 : index
    %c0_249 = arith.constant 0 : index
    %510 = vector.load %arg8[%c1_246, %c2_247, %c0_248, %c0_249] : memref<3x7x4x128xf32, #tpu.memory_space<vmem>>, vector<1x1x4x128xf32>
    %511 = vector.shape_cast %510 : vector<1x1x4x128xf32> to vector<4x128xf32>
    %512 = vector.extract_strided_slice %434 {offsets = [0, 2, 0], sizes = [2, 1, 128], strides = [1, 1, 1]} : vector<2x7x128xf32> to vector<2x1x128xf32>
    %513 = vector.shape_cast %511 : vector<4x128xf32> to vector<1x4x128xf32>
    %514 = vector.broadcast %513 : vector<1x4x128xf32> to vector<2x4x128xf32>
    %515 = vector.broadcast %512 : vector<2x1x128xf32> to vector<2x4x128xf32>
    %516 = arith.mulf %514, %515 : vector<2x4x128xf32>
    %517 = arith.addf %509, %516 : vector<2x4x128xf32>
    %c1_250 = arith.constant 1 : index
    %c3_251 = arith.constant 3 : index
    %c0_252 = arith.constant 0 : index
    %c0_253 = arith.constant 0 : index
    %518 = vector.load %arg8[%c1_250, %c3_251, %c0_252, %c0_253] : memref<3x7x4x128xf32, #tpu.memory_space<vmem>>, vector<1x1x4x128xf32>
    %519 = vector.shape_cast %518 : vector<1x1x4x128xf32> to vector<4x128xf32>
    %520 = vector.extract_strided_slice %434 {offsets = [0, 3, 0], sizes = [2, 1, 128], strides = [1, 1, 1]} : vector<2x7x128xf32> to vector<2x1x128xf32>
    %521 = vector.shape_cast %519 : vector<4x128xf32> to vector<1x4x128xf32>
    %522 = vector.broadcast %521 : vector<1x4x128xf32> to vector<2x4x128xf32>
    %523 = vector.broadcast %520 : vector<2x1x128xf32> to vector<2x4x128xf32>
    %524 = arith.mulf %522, %523 : vector<2x4x128xf32>
    %525 = arith.addf %517, %524 : vector<2x4x128xf32>
    %c1_254 = arith.constant 1 : index
    %c4_255 = arith.constant 4 : index
    %c0_256 = arith.constant 0 : index
    %c0_257 = arith.constant 0 : index
    %526 = vector.load %arg8[%c1_254, %c4_255, %c0_256, %c0_257] : memref<3x7x4x128xf32, #tpu.memory_space<vmem>>, vector<1x1x4x128xf32>
    %527 = vector.shape_cast %526 : vector<1x1x4x128xf32> to vector<4x128xf32>
    %528 = vector.extract_strided_slice %434 {offsets = [0, 4, 0], sizes = [2, 1, 128], strides = [1, 1, 1]} : vector<2x7x128xf32> to vector<2x1x128xf32>
    %529 = vector.shape_cast %527 : vector<4x128xf32> to vector<1x4x128xf32>
    %530 = vector.broadcast %529 : vector<1x4x128xf32> to vector<2x4x128xf32>
    %531 = vector.broadcast %528 : vector<2x1x128xf32> to vector<2x4x128xf32>
    %532 = arith.mulf %530, %531 : vector<2x4x128xf32>
    %533 = arith.addf %525, %532 : vector<2x4x128xf32>
    %c1_258 = arith.constant 1 : index
    %c5_259 = arith.constant 5 : index
    %c0_260 = arith.constant 0 : index
    %c0_261 = arith.constant 0 : index
    %534 = vector.load %arg8[%c1_258, %c5_259, %c0_260, %c0_261] : memref<3x7x4x128xf32, #tpu.memory_space<vmem>>, vector<1x1x4x128xf32>
    %535 = vector.shape_cast %534 : vector<1x1x4x128xf32> to vector<4x128xf32>
    %536 = vector.extract_strided_slice %434 {offsets = [0, 5, 0], sizes = [2, 1, 128], strides = [1, 1, 1]} : vector<2x7x128xf32> to vector<2x1x128xf32>
    %537 = vector.shape_cast %535 : vector<4x128xf32> to vector<1x4x128xf32>
    %538 = vector.broadcast %537 : vector<1x4x128xf32> to vector<2x4x128xf32>
    %539 = vector.broadcast %536 : vector<2x1x128xf32> to vector<2x4x128xf32>
    %540 = arith.mulf %538, %539 : vector<2x4x128xf32>
    %541 = arith.addf %533, %540 : vector<2x4x128xf32>
    %c1_262 = arith.constant 1 : index
    %c6_263 = arith.constant 6 : index
    %c0_264 = arith.constant 0 : index
    %c0_265 = arith.constant 0 : index
    %542 = vector.load %arg8[%c1_262, %c6_263, %c0_264, %c0_265] : memref<3x7x4x128xf32, #tpu.memory_space<vmem>>, vector<1x1x4x128xf32>
    %543 = vector.shape_cast %542 : vector<1x1x4x128xf32> to vector<4x128xf32>
    %544 = vector.extract_strided_slice %434 {offsets = [0, 6, 0], sizes = [2, 1, 128], strides = [1, 1, 1]} : vector<2x7x128xf32> to vector<2x1x128xf32>
    %545 = vector.shape_cast %543 : vector<4x128xf32> to vector<1x4x128xf32>
    %546 = vector.broadcast %545 : vector<1x4x128xf32> to vector<2x4x128xf32>
    %547 = vector.broadcast %544 : vector<2x1x128xf32> to vector<2x4x128xf32>
    %548 = arith.mulf %546, %547 : vector<2x4x128xf32>
    %549 = arith.addf %541, %548 : vector<2x4x128xf32>
    %c127_i32_266 = arith.constant 127 : i32
    %550 = tpu.dynamic_rotate %434 by %c127_i32_266 dim 2 : vector<2x7x128xf32>, i32 -> vector<2x7x128xf32>
    %cst_267 = arith.constant 0.000000e+00 : f32
    %551 = vector.shape_cast %4 : vector<1x1x128xi1> to vector<1x1x128xi1>
    %552 = vector.broadcast %551 : vector<1x1x128xi1> to vector<2x7x128xi1>
    %553 = vector.broadcast %cst_267 : f32 to vector<2x7x128xf32>
    %554 = arith.select %552, %550, %553 : vector<2x7x128xi1>, vector<2x7x128xf32>
    %c2_268 = arith.constant 2 : index
    %c0_269 = arith.constant 0 : index
    %c0_270 = arith.constant 0 : index
    %c0_271 = arith.constant 0 : index
    %555 = vector.load %arg8[%c2_268, %c0_269, %c0_270, %c0_271] : memref<3x7x4x128xf32, #tpu.memory_space<vmem>>, vector<1x1x4x128xf32>
    %556 = vector.shape_cast %555 : vector<1x1x4x128xf32> to vector<4x128xf32>
    %557 = vector.extract_strided_slice %554 {offsets = [0, 0, 0], sizes = [2, 1, 128], strides = [1, 1, 1]} : vector<2x7x128xf32> to vector<2x1x128xf32>
    %558 = vector.shape_cast %556 : vector<4x128xf32> to vector<1x4x128xf32>
    %559 = vector.broadcast %558 : vector<1x4x128xf32> to vector<2x4x128xf32>
    %560 = vector.broadcast %557 : vector<2x1x128xf32> to vector<2x4x128xf32>
    %561 = arith.mulf %559, %560 : vector<2x4x128xf32>
    %c2_272 = arith.constant 2 : index
    %c1_273 = arith.constant 1 : index
    %c0_274 = arith.constant 0 : index
    %c0_275 = arith.constant 0 : index
    %562 = vector.load %arg8[%c2_272, %c1_273, %c0_274, %c0_275] : memref<3x7x4x128xf32, #tpu.memory_space<vmem>>, vector<1x1x4x128xf32>
    %563 = vector.shape_cast %562 : vector<1x1x4x128xf32> to vector<4x128xf32>
    %564 = vector.extract_strided_slice %554 {offsets = [0, 1, 0], sizes = [2, 1, 128], strides = [1, 1, 1]} : vector<2x7x128xf32> to vector<2x1x128xf32>
    %565 = vector.shape_cast %563 : vector<4x128xf32> to vector<1x4x128xf32>
    %566 = vector.broadcast %565 : vector<1x4x128xf32> to vector<2x4x128xf32>
    %567 = vector.broadcast %564 : vector<2x1x128xf32> to vector<2x4x128xf32>
    %568 = arith.mulf %566, %567 : vector<2x4x128xf32>
    %569 = arith.addf %561, %568 : vector<2x4x128xf32>
    %c2_276 = arith.constant 2 : index
    %c2_277 = arith.constant 2 : index
    %c0_278 = arith.constant 0 : index
    %c0_279 = arith.constant 0 : index
    %570 = vector.load %arg8[%c2_276, %c2_277, %c0_278, %c0_279] : memref<3x7x4x128xf32, #tpu.memory_space<vmem>>, vector<1x1x4x128xf32>
    %571 = vector.shape_cast %570 : vector<1x1x4x128xf32> to vector<4x128xf32>
    %572 = vector.extract_strided_slice %554 {offsets = [0, 2, 0], sizes = [2, 1, 128], strides = [1, 1, 1]} : vector<2x7x128xf32> to vector<2x1x128xf32>
    %573 = vector.shape_cast %571 : vector<4x128xf32> to vector<1x4x128xf32>
    %574 = vector.broadcast %573 : vector<1x4x128xf32> to vector<2x4x128xf32>
    %575 = vector.broadcast %572 : vector<2x1x128xf32> to vector<2x4x128xf32>
    %576 = arith.mulf %574, %575 : vector<2x4x128xf32>
    %577 = arith.addf %569, %576 : vector<2x4x128xf32>
    %c2_280 = arith.constant 2 : index
    %c3_281 = arith.constant 3 : index
    %c0_282 = arith.constant 0 : index
    %c0_283 = arith.constant 0 : index
    %578 = vector.load %arg8[%c2_280, %c3_281, %c0_282, %c0_283] : memref<3x7x4x128xf32, #tpu.memory_space<vmem>>, vector<1x1x4x128xf32>
    %579 = vector.shape_cast %578 : vector<1x1x4x128xf32> to vector<4x128xf32>
    %580 = vector.extract_strided_slice %554 {offsets = [0, 3, 0], sizes = [2, 1, 128], strides = [1, 1, 1]} : vector<2x7x128xf32> to vector<2x1x128xf32>
    %581 = vector.shape_cast %579 : vector<4x128xf32> to vector<1x4x128xf32>
    %582 = vector.broadcast %581 : vector<1x4x128xf32> to vector<2x4x128xf32>
    %583 = vector.broadcast %580 : vector<2x1x128xf32> to vector<2x4x128xf32>
    %584 = arith.mulf %582, %583 : vector<2x4x128xf32>
    %585 = arith.addf %577, %584 : vector<2x4x128xf32>
    %c2_284 = arith.constant 2 : index
    %c4_285 = arith.constant 4 : index
    %c0_286 = arith.constant 0 : index
    %c0_287 = arith.constant 0 : index
    %586 = vector.load %arg8[%c2_284, %c4_285, %c0_286, %c0_287] : memref<3x7x4x128xf32, #tpu.memory_space<vmem>>, vector<1x1x4x128xf32>
    %587 = vector.shape_cast %586 : vector<1x1x4x128xf32> to vector<4x128xf32>
    %588 = vector.extract_strided_slice %554 {offsets = [0, 4, 0], sizes = [2, 1, 128], strides = [1, 1, 1]} : vector<2x7x128xf32> to vector<2x1x128xf32>
    %589 = vector.shape_cast %587 : vector<4x128xf32> to vector<1x4x128xf32>
    %590 = vector.broadcast %589 : vector<1x4x128xf32> to vector<2x4x128xf32>
    %591 = vector.broadcast %588 : vector<2x1x128xf32> to vector<2x4x128xf32>
    %592 = arith.mulf %590, %591 : vector<2x4x128xf32>
    %593 = arith.addf %585, %592 : vector<2x4x128xf32>
    %c2_288 = arith.constant 2 : index
    %c5_289 = arith.constant 5 : index
    %c0_290 = arith.constant 0 : index
    %c0_291 = arith.constant 0 : index
    %594 = vector.load %arg8[%c2_288, %c5_289, %c0_290, %c0_291] : memref<3x7x4x128xf32, #tpu.memory_space<vmem>>, vector<1x1x4x128xf32>
    %595 = vector.shape_cast %594 : vector<1x1x4x128xf32> to vector<4x128xf32>
    %596 = vector.extract_strided_slice %554 {offsets = [0, 5, 0], sizes = [2, 1, 128], strides = [1, 1, 1]} : vector<2x7x128xf32> to vector<2x1x128xf32>
    %597 = vector.shape_cast %595 : vector<4x128xf32> to vector<1x4x128xf32>
    %598 = vector.broadcast %597 : vector<1x4x128xf32> to vector<2x4x128xf32>
    %599 = vector.broadcast %596 : vector<2x1x128xf32> to vector<2x4x128xf32>
    %600 = arith.mulf %598, %599 : vector<2x4x128xf32>
    %601 = arith.addf %593, %600 : vector<2x4x128xf32>
    %c2_292 = arith.constant 2 : index
    %c6_293 = arith.constant 6 : index
    %c0_294 = arith.constant 0 : index
    %c0_295 = arith.constant 0 : index
    %602 = vector.load %arg8[%c2_292, %c6_293, %c0_294, %c0_295] : memref<3x7x4x128xf32, #tpu.memory_space<vmem>>, vector<1x1x4x128xf32>
    %603 = vector.shape_cast %602 : vector<1x1x4x128xf32> to vector<4x128xf32>
    %604 = vector.extract_strided_slice %554 {offsets = [0, 6, 0], sizes = [2, 1, 128], strides = [1, 1, 1]} : vector<2x7x128xf32> to vector<2x1x128xf32>
    %605 = vector.shape_cast %603 : vector<4x128xf32> to vector<1x4x128xf32>
    %606 = vector.broadcast %605 : vector<1x4x128xf32> to vector<2x4x128xf32>
    %607 = vector.broadcast %604 : vector<2x1x128xf32> to vector<2x4x128xf32>
    %608 = arith.mulf %606, %607 : vector<2x4x128xf32>
    %609 = arith.addf %601, %608 : vector<2x4x128xf32>
    %610 = arith.addf %494, %549 : vector<2x4x128xf32>
    %611 = arith.addf %610, %609 : vector<2x4x128xf32>
    %c0_296 = arith.constant 0 : index
    %c0_297 = arith.constant 0 : index
    %612 = vector.load %arg9[%c0_296, %c0_297] : memref<4x128xf32, #tpu.memory_space<vmem>>, vector<4x128xf32>
    %613 = vector.shape_cast %612 : vector<4x128xf32> to vector<1x4x128xf32>
    %614 = vector.broadcast %613 : vector<1x4x128xf32> to vector<2x4x128xf32>
    %615 = arith.addf %611, %614 : vector<2x4x128xf32>
    %c0_298 = arith.constant 0 : index
    %c0_299 = arith.constant 0 : index
    %c0_300 = arith.constant 0 : index
    %616 = vector.load %arg10[%c0_298, %c0_299, %c0_300] : memref<2x4x128xf32, #tpu.memory_space<vmem>>, vector<2x4x128xf32>
    tpu.vector_store %arg10[%c0_298, %c0_299, %c0_300], %615 {strides = array<i32>} : memref<2x4x128xf32, #tpu.memory_space<vmem>>, vector<2x4x128xf32>,
    return
  }
  func.func @transform_0(%arg0: i32) -> (i32, i32, i32) {
    %c0_i32 = arith.constant 0 : i32
    %c0_i32_0 = arith.constant 0 : i32
    %c0_i32_1 = arith.constant 0 : i32
    return %arg0, %c0_i32, %c0_i32_0 : i32, i32, i32
  }
  func.func @transform_1(%arg0: i32) -> (i32, i32, i32, i32) {
    %c0_i32 = arith.constant 0 : i32
    %c0_i32_0 = arith.constant 0 : i32
    %c0_i32_1 = arith.constant 0 : i32
    %c0_i32_2 = arith.constant 0 : i32
    %c0_i32_3 = arith.constant 0 : i32
    return %c0_i32, %c0_i32_0, %c0_i32_1, %c0_i32_2 : i32, i32, i32, i32
  }
  func.func @transform_2(%arg0: i32) -> (i32, i32) {
    %c0_i32 = arith.constant 0 : i32
    %c0_i32_0 = arith.constant 0 : i32
    %c0_i32_1 = arith.constant 0 : i32
    return %c0_i32, %c0_i32_0 : i32, i32
  }
  func.func @transform_3(%arg0: i32) -> (i32, i32, i32, i32) {
    %c0_i32 = arith.constant 0 : i32
    %c0_i32_0 = arith.constant 0 : i32
    %c0_i32_1 = arith.constant 0 : i32
    %c0_i32_2 = arith.constant 0 : i32
    %c0_i32_3 = arith.constant 0 : i32
    return %c0_i32, %c0_i32_0, %c0_i32_1, %c0_i32_2 : i32, i32, i32, i32
  }
  func.func @transform_4(%arg0: i32) -> (i32, i32) {
    %c0_i32 = arith.constant 0 : i32
    %c0_i32_0 = arith.constant 0 : i32
    %c0_i32_1 = arith.constant 0 : i32
    return %c0_i32, %c0_i32_0 : i32, i32
  }
  func.func @transform_5(%arg0: i32) -> (i32, i32, i32, i32) {
    %c0_i32 = arith.constant 0 : i32
    %c0_i32_0 = arith.constant 0 : i32
    %c0_i32_1 = arith.constant 0 : i32
    %c0_i32_2 = arith.constant 0 : i32
    %c0_i32_3 = arith.constant 0 : i32
    return %c0_i32, %c0_i32_0, %c0_i32_1, %c0_i32_2 : i32, i32, i32, i32
  }
  func.func @transform_6(%arg0: i32) -> (i32, i32) {
    %c0_i32 = arith.constant 0 : i32
    %c0_i32_0 = arith.constant 0 : i32
    %c0_i32_1 = arith.constant 0 : i32
    return %c0_i32, %c0_i32_0 : i32, i32
  }
  func.func @transform_7(%arg0: i32) -> (i32, i32, i32, i32) {
    %c0_i32 = arith.constant 0 : i32
    %c0_i32_0 = arith.constant 0 : i32
    %c0_i32_1 = arith.constant 0 : i32
    %c0_i32_2 = arith.constant 0 : i32
    %c0_i32_3 = arith.constant 0 : i32
    return %c0_i32, %c0_i32_0, %c0_i32_1, %c0_i32_2 : i32, i32, i32, i32
  }
  func.func @transform_8(%arg0: i32) -> (i32, i32) {
    %c0_i32 = arith.constant 0 : i32
    %c0_i32_0 = arith.constant 0 : i32
    %c0_i32_1 = arith.constant 0 : i32
    return %c0_i32, %c0_i32_0 : i32, i32
  }
  func.func @transform_9(%arg0: i32) -> (i32, i32, i32) {
    %c0_i32 = arith.constant 0 : i32
    %c0_i32_0 = arith.constant 0 : i32
    %c0_i32_1 = arith.constant 0 : i32
    return %arg0, %c0_i32, %c0_i32_0 : i32, i32, i32
  }
}

</mosaic_0001>

<bundles_post_ra>
// kernel: tpu_custom_call.1
= control target key start
LH: loop header
LB: loop body
LE: loop exit
PB: predicated region body
PF: predicated region fallthrough
CT: control target
= control target key end

     0   :  { %s1173_s11 = smov 127   ;;  %s1174_s12 = smov 1   ;;  %s1792_s0 = inlined_call_operand.vmem [shape: f32[2,4,128], index: 0, kind: input, shape index: {}]   ;;  %s1793_s1 = inlined_call_operand.vmem [shape: f32[3,4,7,128], index: 1, kind: input, shape index: {}]   ;;  %s1794_s2 = inlined_call_operand.vmem [shape: f32[7,128], index: 2, kind: input, shape index: {}]   ;;  %s1795_s3 = inlined_call_operand.vmem [shape: f32[3,7,5,128], index: 3, kind: input, shape index: {}]   ;;  %s1796_s4 = inlined_call_operand.vmem [shape: f32[5,128], index: 4, kind: input, shape index: {}]   ;;  %s1797_s5 = inlined_call_operand.vmem [shape: f32[3,5,7,128], index: 5, kind: input, shape index: {}]   ;;  %s1798_s6 = inlined_call_operand.vmem [shape: f32[7,128], index: 6, kind: input, shape index: {}]   ;;  %s1799_s7 = inlined_call_operand.vmem [shape: f32[3,7,4,128], index: 7, kind: input, shape index: {}]   ;;  %s1800_s8 = inlined_call_operand.vmem [shape: f32[4,128], index: 8, kind: input, shape index: {}]   ;;  %s1801_s9 = inlined_call_operand.hbm [shape: f32[2,4,128], index: 9, kind: output, shape index: {}]  }
   0x1   :  { %v37_v0 = vld [vmem:[%s1792_s0] sm:$0xf]  ;;  %v38_v1 = vld [vmem:[%s1792_s0 + $0x4] sm:$0xf] }
   0x2   :  { %154 = vrot.lane.b32.xlu1 %v37_v0, %s1173_s11  ;;  %39 = vrot.lane.b32.xlu0 %v37_v0, %s1174_s12 }
   0x6   :  { %156 = vrot.lane.b32.xlu1 %v38_v1, %s1173_s11  ;;  %41 = vrot.lane.b32.xlu0 %v38_v1, %s1174_s12 }
   0x7   :  { %14 = vsyncpa [#allocation3], 0  ;;  %v33_v2 = vlaneseq  ;;  %v1084_v10 = vld [vmem:[%s1793_s1 + $0x20] sm:$0x7f]  ;;  %v1085_v11 = vld [vmem:[%s1793_s1 + $0x28] sm:$0x7f] }
   0x8   :  { %v1086_v19 = vld [vmem:[%s1793_s1 + $0x30] sm:$0x7f]  ;;  %v1087_v23 = vld [vmem:[%s1793_s1 + $0x38] sm:$0x7f]  ;;  %v1088_v31 = vld [vmem:[%s1793_s1 + $0x40] sm:$0x7f] }
   0x9   :  { %v1238_v3 = vshrl.u32 %v33_v2, 7  ;;  %v1259_v13 = vand.u32 127, %v33_v2  ;;  %v1089_v32 = vld [vmem:[%s1793_s1 + $0x48] sm:$0x7f]  ;;  %v1090_v36 = vld [vmem:[%s1793_s1 + $0x50] sm:$0x7f] }
   0xa   :  { %v47_v40 = vld [vmem:[%s1793_s1] sm:$0x7f]  ;;  %v1081_v41 = vld [vmem:[%s1793_s1 + $0x8] sm:$0x7f]  ;;  %v1082_v43 = vld [vmem:[%s1793_s1 + $0x10] sm:$0x7f] }
   0xb   :  { %v1241_v4 = vsub.s32 0, %v1238_v3  ;;  %v1244_v5 = vsub.s32 1, %v1238_v3  ;;  %v1257_v12 = vsub.s32 2, %v1238_v3  ;;  %v1263_v15 = vsub.s32 3, %v1238_v3  ;;  %v1083_v56 = vld [vmem:[%s1793_s1 + $0x18] sm:$0x7f] }
   0xc   :  { %vm36_vm0 = vcmp.lt.s32.totalorder %v1259_v13, 127  ;;  %vm35_vm1 = vcmp.ge.s32.totalorder %v1259_v13, 1  ;;  %v1091_v63 = vld [vmem:[%s1793_s1 + $0x58] sm:$0x7f]  ;;  %v1145_v13 = vld [vmem:[%s1799_s7 + $0x50] sm:$0xf] }
   0xd   :  { %v105_v6 = vrot.slane %v37_v0, %v1241_v4  ;;  %v117_v7 = vrot.slane %v37_v0, %v1244_v5  ;;  %v109_v8 = vrot.slane %v38_v1, %v1241_v4  ;;  %v121_v9 = vrot.slane %v38_v1, %v1244_v5  ;;  %s1175_s15 = smov [#allocation2]  }
   0xe   :  { %v131_v14 = vrot.slane %v37_v0, %v1257_v12  ;;  %v135_v18 = vrot.slane %v38_v1, %v1257_v12  ;;  %v145_v22 = vrot.slane %v37_v0, %v1263_v15  ;;  %v149_v24 = vrot.slane %v38_v1, %v1263_v15  ;;  %s1070_s16 = sshll.u32 %s1175_s15, 4  ;;  %s1071_s16 = int_to_ptr.vmem [resolvable:$true] %s1070_s16 }
   0xf   :  { %v110_v16 = vmul.f32 %v1084_v10, %v105_v6  ;;  %v122_v17 = vmul.f32 %v1085_v11, %v117_v7  ;;  %v111_v20 = vmul.f32 %v1084_v10, %v109_v8  ;;  %v123_v21 = vmul.f32 %v1085_v11, %v121_v9  ;;  %s1151_s17 = scalar_lea.vmem %s1071_s16, 128  ;;  %p1156_p1 = scmp.lt.s32.totalorder %s1071_s16, %s1071_s16 }
  0x10   :  { %v136_v26 = vmul.f32 %v1086_v19, %v131_v14  ;;  %v137_v30 = vmul.f32 %v1086_v19, %v135_v18  ;;  %v150_v35 = vmul.f32 %v1087_v23, %v145_v22  ;;  %v151_v42 = vmul.f32 %v1087_v23, %v149_v24  ;;  %p1152_p0 = scmp.ne.s32.totalorder %s1071_s16, %s1151_s17  ;;  %p1157_p2 = scmp.lt.s32.totalorder %s1151_s17, %s1151_s17 }
  0x11   :  { %v124_v25 = vadd.f32 %v122_v17, %v110_v16  ;;  %v125_v29 = vadd.f32 %v123_v21, %v111_v20 }
  0x12   :  { %p1158_p3 = por %p1157_p2, %p1156_p1 }
  0x13   :  { %v138_v47 = vadd.f32 %v136_v26, %v124_v25  ;;  %v139_v53 = vadd.f32 %v137_v30, %v125_v29 }
  0x14   :  { %p1159_p4 = pnand %p1158_p3, %p1152_p0 }
  0x15   :  { %v152_v8 = vadd.f32 %v150_v35, %v138_v47 }
  0x74   :  { %v155_v27 = vpop.permute.xlu1 %154  ;;  %v40_v28 = vpop.permute.xlu0 %39 }
  0x75   :  { %v160_v33 = vsel %vm36_vm0, %v155_v27, 0.0  ;;  %v45_v34 = vsel %vm35_vm1, %v40_v28, 0.0 }
  0x76   :  { %v167_v37 = vrot.slane %v160_v33, %v1241_v4  ;;  %v179_v38 = vrot.slane %v160_v33, %v1244_v5  ;;  %v193_v39 = vrot.slane %v160_v33, %v1257_v12  ;;  %v51_v44 = vrot.slane %v45_v34, %v1241_v4 }
  0x77   :  { %v63_v45 = vrot.slane %v45_v34, %v1244_v5  ;;  %v77_v46 = vrot.slane %v45_v34, %v1257_v12  ;;  %v91_v50 = vrot.slane %v45_v34, %v1263_v15  ;;  %v207_v55 = vrot.slane %v160_v33, %v1263_v15 }
  0x78   :  { %v172_v48 = vmul.f32 %v1088_v31, %v167_v37  ;;  %v184_v49 = vmul.f32 %v1089_v32, %v179_v38  ;;  %v157_v51 = vpop.permute.xlu1 %156  ;;  %v42_v52 = vpop.permute.xlu0 %41  ;;  %v198_v54 = vmul.f32 %v1090_v36, %v193_v39  ;;  %v56_v57 = vmul.f32 %v51_v44, %v47_v40 }
  0x79   :  { %v68_v58 = vmul.f32 %v1081_v41, %v63_v45  ;;  %v82_v60 = vmul.f32 %v1082_v43, %v77_v46  ;;  %v161_v61 = vsel %vm36_vm0, %v157_v51, 0.0  ;;  %v46_v62 = vsel %vm35_vm1, %v42_v52, 0.0 }
  0x7a   :  { %v186_v59 = vadd.f32 %v184_v49, %v172_v48  ;;  %v171_v1 = vrot.slane %v161_v61, %v1241_v4  ;;  %v183_v2 = vrot.slane %v161_v61, %v1244_v5  ;;  %v197_v6 = vrot.slane %v161_v61, %v1257_v12  ;;  %v1098_v48 = vld [vmem:[%s1795_s3 + $0x38] sm:$0x1f]  ;;  %v1099_v49 = vld [vmem:[%s1795_s3 + $0x40] sm:$0x1f] }
  0x7b   :  { %v70_v0 = vadd.f32 %v68_v58, %v56_v57  ;;  %v96_v7 = vmul.f32 %v1083_v56, %v91_v50  ;;  %v55_v9 = vrot.slane %v46_v62, %v1241_v4  ;;  %v67_v10 = vrot.slane %v46_v62, %v1244_v5 }
  0x7c   :  { %v200_v11 = vadd.f32 %v198_v54, %v186_v59  ;;  %v173_v16 = vmul.f32 %v1088_v31, %v171_v1  ;;  %v185_v17 = vmul.f32 %v1089_v32, %v183_v2  ;;  %v212_v18 = vmul.f32 %v1091_v63, %v207_v55  ;;  %v220_v31 = vld [vmem:[%s1794_s2] sm:$0x7f]  ;;  %v1102_v1 = vld [vmem:[%s1795_s3 + $0x58] sm:$0x1f] }
  0x7d   :  { %v84_v14 = vadd.f32 %v82_v60, %v70_v0  ;;  %v199_v19 = vmul.f32 %v1090_v36, %v197_v6  ;;  %v57_v20 = vmul.f32 %v55_v9, %v47_v40  ;;  %v69_v21 = vmul.f32 %v1081_v41, %v67_v10  ;;  %v1373_v9 = vld [vmem:[%s1795_s3 + $0x60] sm:$0x1f]  ;;  %v1378_v10 = vld [vmem:[%s1795_s3 + $0x68] sm:$0x1f] }
  0x7e   :  { %v187_v23 = vadd.f32 %v185_v17, %v173_v16  ;;  %v81_v24 = vrot.slane %v46_v62, %v1257_v12  ;;  %v95_v25 = vrot.slane %v46_v62, %v1263_v15  ;;  %v214_v27 = vadd.f32 %v212_v18, %v200_v11  ;;  %v1101_v62 = vld [vmem:[%s1795_s3 + $0x50] sm:$0x1f]  ;;  %v231_v16 = vld [vmem:[%s1795_s3] sm:$0x1f]  ;;  %v1092_v17 = vld [vmem:[%s1795_s3 + $0x8] sm:$0x1f] }
  0x7f   :  { %v98_v22 = vadd.f32 %v96_v7, %v84_v14  ;;  %v71_v26 = vadd.f32 %v69_v21, %v57_v20  ;;  %v211_v29 = vrot.slane %v161_v61, %v1263_v15  ;;  %v153_v32 = vadd.f32 %v151_v42, %v139_v53  ;;  %v1100_v53 = vld [vmem:[%s1795_s3 + $0x48] sm:$0x1f] }
  0x80   :  { %v83_v30 = vmul.f32 %v1082_v43, %v81_v24  ;;  %v201_v34 = vadd.f32 %v199_v19, %v187_v23  ;;  %v97_v36 = vmul.f32 %v1083_v56, %v95_v25  ;;  %v1348_v54 = vsub.s32 4, %v1238_v3 }
  0x81   :  { %v216_v28 = vadd.f32 %v152_v8, %v98_v22  ;;  %v213_v38 = vmul.f32 %v1091_v63, %v211_v29  ;;  %v1355_v58 = vsub.s32 5, %v1238_v3  ;;  %v1358_v59 = vsub.s32 6, %v1238_v3 }
  0x82   :  { %v85_v35 = vadd.f32 %v83_v30, %v71_v26  ;;  %v1093_v26 = vld [vmem:[%s1795_s3 + $0x10] sm:$0x1f] }
  0x83   :  { %v218_v33 = vadd.f32 %v216_v28, %v214_v27  ;;  %v215_v41 = vadd.f32 %v213_v38, %v201_v34 }
  0x84   :  { %v99_v39 = vadd.f32 %v97_v36, %v85_v35 }
  0x85   :  { %v221_v37 = vadd.f32 %v220_v31, %v218_v33 }
  0x86   :  { %v217_v44 = vadd.f32 %v153_v32, %v99_v39 }
  0x87   :  { %v223_v40 = vmax.f32 %v221_v37, 0.0 }
  0x88   :  { %v219_v45 = vadd.f32 %v217_v44, %v215_v41  ;;  %v1095_v41 = vld [vmem:[%s1795_s3 + $0x20] sm:$0x1f] }
  0x89   :  { %225 = vrot.lane.b32.xlu0 %v223_v40, %s1174_s12  ;;  %v331_v42 = vrot.slane %v223_v40, %v1241_v4  ;;  %v343_v47 = vrot.slane %v223_v40, %v1244_v5  ;;  %v357_v52 = vrot.slane %v223_v40, %v1257_v12  ;;  %v371_v61 = vrot.slane %v223_v40, %v1263_v15 }
  0x8a   :  { %v222_v46 = vadd.f32 %v220_v31, %v219_v45  ;;  %v385_v0 = vrot.slane %v223_v40, %v1348_v54  ;;  %v399_v3 = vrot.slane %v223_v40, %v1355_v58  ;;  %v413_v8 = vrot.slane %v223_v40, %v1358_v59  ;;  %v1094_v31 = vld [vmem:[%s1795_s3 + $0x18] sm:$0x1f] }
  0x8b   :  { %v336_v50 = vmul.f32 %v1098_v48, %v331_v42  ;;  %v348_v51 = vmul.f32 %v1099_v49, %v343_v47  ;;  %v362_v60 = vmul.f32 %v1100_v53, %v357_v52  ;;  %v376_v7 = vmul.f32 %v1101_v62, %v371_v61 }
  0x8c   :  { %v1328_v43 = vmax.f32 %v222_v46, 0.0  ;;  %v390_v20 = vmul.f32 %v1102_v1, %v385_v0  ;;  %v404_v28 = vmul.f32 %v1373_v9, %v399_v3  ;;  %v1407_v29 = vmul.f32 %v1378_v10, %v413_v8 }
  0x8d   :  { %422 = vrot.lane.b32.xlu0 %v223_v40, %s1173_s11  ;;  %v350_v55 = vadd.f32 %v348_v51, %v336_v50 }
  0x8e   :  { %227 = vrot.lane.b32.xlu1 %v1328_v43, %s1174_s12  ;;  %v335_v56 = vrot.slane %v1328_v43, %v1241_v4  ;;  %v347_v57 = vrot.slane %v1328_v43, %v1244_v5  ;;  %v361_v14 = vrot.slane %v1328_v43, %v1257_v12  ;;  %v375_v21 = vrot.slane %v1328_v43, %v1263_v15 }
  0x8f   :  { %v364_v63 = vadd.f32 %v362_v60, %v350_v55  ;;  %v389_v30 = vrot.slane %v1328_v43, %v1348_v54  ;;  %v403_v35 = vrot.slane %v1328_v43, %v1355_v58  ;;  %v417_v39 = vrot.slane %v1328_v43, %v1358_v59 }
  0x90   :  { %v337_v2 = vmul.f32 %v1098_v48, %v335_v56  ;;  %v349_v6 = vmul.f32 %v1099_v49, %v347_v57  ;;  %v363_v34 = vmul.f32 %v1100_v53, %v361_v14  ;;  %v377_v38 = vmul.f32 %v1101_v62, %v375_v21  ;;  %v1105_v62 = vld [vmem:[%s1795_s3 + $0x70] sm:$0x1f] }
  0x91   :  { %v378_v19 = vadd.f32 %v376_v7, %v364_v63  ;;  %v391_v61 = vmul.f32 %v1102_v1, %v389_v30  ;;  %v1106_v63 = vld [vmem:[%s1795_s3 + $0x78] sm:$0x1f] }
  0x92   :  { %424 = vrot.lane.b32.xlu1 %v1328_v43, %s1173_s11  ;;  %v351_v25 = vadd.f32 %v349_v6, %v337_v2  ;;  %v1096_v2 = vld [vmem:[%s1795_s3 + $0x28] sm:$0x1f] }
  0x93   :  { %v392_v46 = vadd.f32 %v390_v20, %v378_v19  ;;  %v1107_v19 = vld [vmem:[%s1795_s3 + $0x80] sm:$0x1f] }
  0x94   :  { %v365_v47 = vadd.f32 %v363_v34, %v351_v25 }
  0x95   :  { %v406_v8 = vadd.f32 %v404_v28, %v392_v46 }
  0x96   :  { %v379_v14 = vadd.f32 %v377_v38, %v365_v47  ;;  %v1109_v38 = vld [vmem:[%s1795_s3 + $0x90] sm:$0x1f] }
  0xfb   :  { %v226_v11 = vpop.permute.xlu0 %225 }
  0xfc   :  { %v1390_v18 = vsel %vm35_vm1, %v226_v11, 0.0 }
  0xfd   :  { %v235_v22 = vrot.slane %v1390_v18, %v1241_v4  ;;  %v247_v23 = vrot.slane %v1390_v18, %v1244_v5  ;;  %v261_v24 = vrot.slane %v1390_v18, %v1257_v12  ;;  %v275_v27 = vrot.slane %v1390_v18, %v1263_v15 }
  0xfe   :  { %v289_v37 = vrot.slane %v1390_v18, %v1348_v54  ;;  %v303_v60 = vrot.slane %v1390_v18, %v1355_v58 }
  0xff   :  { %v240_v32 = vmul.f32 %v235_v22, %v231_v16  ;;  %v252_v33 = vmul.f32 %v1092_v17, %v247_v23  ;;  %v423_v36 = vpop.permute.xlu0 %422  ;;  %v266_v45 = vmul.f32 %v1093_v26, %v261_v24  ;;  %v280_v48 = vmul.f32 %v1094_v31, %v275_v27  ;;  %v1108_v27 = vld [vmem:[%s1795_s3 + $0x88] sm:$0x1f] }
 0x100   :  { %v1422_v40 = vsel %vm36_vm0, %v423_v36, 0.0  ;;  %v228_v42 = vpop.permute.xlu1 %227  ;;  %v294_v57 = vmul.f32 %v1095_v41, %v289_v37  ;;  %v1097_v36 = vld [vmem:[%s1795_s3 + $0x30] sm:$0x1f]  ;;  %v393_v37 = vadd.f32 %v391_v61, %v379_v14 }
 0x101   :  { %v254_v44 = vadd.f32 %v252_v33, %v240_v32  ;;  %v1429_v49 = vsel %vm35_vm1, %v228_v42, 0.0  ;;  %v433_v50 = vrot.slane %v1422_v40, %v1241_v4  ;;  %v445_v51 = vrot.slane %v1422_v40, %v1244_v5 }
 0x102   :  { %v239_v53 = vrot.slane %v1429_v49, %v1241_v4  ;;  %v251_v55 = vrot.slane %v1429_v49, %v1244_v5  ;;  %v265_v56 = vrot.slane %v1429_v49, %v1257_v12  ;;  %v459_v0 = vrot.slane %v1422_v40, %v1257_v12 }
 0x103   :  { %v268_v52 = vadd.f32 %v266_v45, %v254_v44  ;;  %v279_v1 = vrot.slane %v1429_v49, %v1263_v15  ;;  %v473_v20 = vrot.slane %v1422_v40, %v1263_v15  ;;  %v438_v23 = vmul.f32 %v1105_v62, %v433_v50  ;;  %v1110_v50 = vld [vmem:[%s1795_s3 + $0x98] sm:$0x1f] }
 0x104   :  { %v241_v7 = vmul.f32 %v239_v53, %v231_v16  ;;  %v253_v3 = vmul.f32 %v1092_v17, %v251_v55  ;;  %v267_v11 = vmul.f32 %v1093_v26, %v265_v56  ;;  %v450_v24 = vmul.f32 %v1106_v63, %v445_v51  ;;  %v425_v25 = vpop.permute.xlu1 %424 }
 0x105   :  { %v282_v6 = vadd.f32 %v280_v48, %v268_v52  ;;  %v308_v16 = vmul.f32 %v1096_v2, %v303_v60  ;;  %v317_v17 = vrot.slane %v1390_v18, %v1358_v59  ;;  %v293_v26 = vrot.slane %v1429_v49, %v1348_v54 }
 0x106   :  { %v255_v22 = vadd.f32 %v253_v3, %v241_v7  ;;  %v487_v28 = vrot.slane %v1422_v40, %v1348_v54  ;;  %v281_v32 = vmul.f32 %v1094_v31, %v279_v1  ;;  %v452_v33 = vadd.f32 %v450_v24, %v438_v23 }
 0x107   :  { %v296_v21 = vadd.f32 %v294_v57, %v282_v6  ;;  %v464_v34 = vmul.f32 %v1107_v19, %v459_v0  ;;  %v307_v18 = vrot.slane %v1429_v49, %v1355_v58  ;;  %v501_v44 = vrot.slane %v1422_v40, %v1355_v58 }
 0x108   :  { %v269_v30 = vadd.f32 %v267_v11, %v255_v22  ;;  %v427_v31 = vsel %vm36_vm0, %v425_v25, 0.0  ;;  %v478_v47 = vmul.f32 %v1108_v27, %v473_v20  ;;  %v295_v48 = vmul.f32 %v1095_v41, %v293_v26  ;;  %v1111_v41 = vld [vmem:[%s1795_s3 + $0xa0] sm:$0x1f] }
 0x109   :  { %v310_v45 = vadd.f32 %v308_v16, %v296_v21  ;;  %v466_v42 = vadd.f32 %v464_v34, %v452_v33  ;;  %v437_v51 = vrot.slane %v427_v31, %v1241_v4  ;;  %v449_v52 = vrot.slane %v427_v31, %v1244_v5 }
 0x10a   :  { %v283_v46 = vadd.f32 %v281_v32, %v269_v30  ;;  %v463_v53 = vrot.slane %v427_v31, %v1257_v12  ;;  %v322_v55 = vmul.f32 %v1097_v36, %v317_v17  ;;  %v492_v57 = vmul.f32 %v1109_v38, %v487_v28 }
 0x10b   :  { %v480_v56 = vadd.f32 %v478_v47, %v466_v42  ;;  %v515_v60 = vrot.slane %v1422_v40, %v1358_v59  ;;  %v439_v0 = vmul.f32 %v1105_v62, %v437_v51  ;;  %v451_v6 = vmul.f32 %v1106_v63, %v449_v52 }
 0x10c   :  { %v297_v61 = vadd.f32 %v295_v48, %v283_v46  ;;  %v477_v7 = vrot.slane %v427_v31, %v1263_v15  ;;  %v324_v3 = vadd.f32 %v322_v55, %v310_v45  ;;  %v321_v1 = vrot.slane %v1429_v49, %v1358_v59  ;;  %v1117_v48 = vld [vmem:[%s1797_s5 + $0x30] sm:$0x7f] }
 0x10d   :  { %v494_v11 = vadd.f32 %v492_v57, %v480_v56  ;;  %v506_v14 = vmul.f32 %v1110_v50, %v501_v44  ;;  %v309_v20 = vmul.f32 %v1096_v2, %v307_v18  ;;  %v453_v21 = vadd.f32 %v451_v6, %v439_v0  ;;  %v1119_v57 = vld [vmem:[%s1797_s5 + $0x40] sm:$0x7f] }
 0x10e   :  { %v465_v22 = vmul.f32 %v1107_v19, %v463_v53  ;;  %v491_v40 = vrot.slane %v427_v31, %v1348_v54  ;;  %v420_v23 = vadd.f32 %v1407_v29, %v406_v8  ;;  %v405_v62 = vmul.f32 %v1373_v9, %v403_v35  ;;  %v528_v29 = vld [vmem:[%s1796_s4] sm:$0x1f]  ;;  %v1118_v53 = vld [vmem:[%s1797_s5 + $0x38] sm:$0x7f] }
 0x10f   :  { %v508_v63 = vadd.f32 %v506_v14, %v494_v11  ;;  %v520_v24 = vmul.f32 %v1111_v41, %v515_v60  ;;  %v311_v25 = vadd.f32 %v309_v20, %v297_v61  ;;  %v479_v17 = vmul.f32 %v1108_v27, %v477_v7  ;;  %v1112_v11 = vld [vmem:[%s1797_s5 + $0x8] sm:$0x7f] }
 0x110   :  { %v467_v16 = vadd.f32 %v465_v22, %v453_v21  ;;  %v505_v49 = vrot.slane %v427_v31, %v1355_v58  ;;  %v524_v26 = vadd.f32 %v420_v23, %v324_v3  ;;  %v407_v2 = vadd.f32 %v405_v62, %v393_v37  ;;  %v1113_v22 = vld [vmem:[%s1797_s5 + $0x10] sm:$0x7f] }
 0x111   :  { %v522_v28 = vadd.f32 %v520_v24, %v508_v63  ;;  %v323_v19 = vmul.f32 %v1097_v36, %v321_v1  ;;  %v493_v30 = vmul.f32 %v1109_v38, %v491_v40  ;;  %v519_v32 = vrot.slane %v427_v31, %v1358_v59  ;;  %v539_v1 = vld [vmem:[%s1797_s5] sm:$0x7f] }
 0x112   :  { %v481_v8 = vadd.f32 %v479_v17, %v467_v16  ;;  %v419_v27 = vmul.f32 %v1378_v10, %v417_v39  ;;  %v507_v34 = vmul.f32 %v1110_v50, %v505_v49  ;;  %v1116_v39 = vld [vmem:[%s1797_s5 + $0x28] sm:$0x7f]  ;;  %v1114_v49 = vld [vmem:[%s1797_s5 + $0x18] sm:$0x7f] }
 0x113   :  { %v526_v9 = vadd.f32 %v524_v26, %v522_v28  ;;  %v325_v35 = vadd.f32 %v323_v19, %v311_v25  ;;  %v521_v44 = vmul.f32 %v1111_v41, %v519_v32  ;;  %v1539_v41 = vld [vmem:[%s1797_s5 + $0x48] sm:$0x7f] }
 0x114   :  { %v495_v33 = vadd.f32 %v493_v30, %v481_v8  ;;  %v421_v37 = vadd.f32 %v419_v27, %v407_v2 }
 0x115   :  { %v529_v18 = vadd.f32 %v528_v29, %v526_v9  ;;  %v1121_v9 = vld [vmem:[%s1797_s5 + $0x50] sm:$0x7f] }
 0x116   :  { %v509_v36 = vadd.f32 %v507_v34, %v495_v33  ;;  %v525_v46 = vadd.f32 %v421_v37, %v325_v35  ;;  %v1122_v35 = vld [vmem:[%s1797_s5 + $0x58] sm:$0x7f]  ;;  %v1115_v33 = vld [vmem:[%s1797_s5 + $0x20] sm:$0x7f] }
 0x117   :  { %v531_v45 = vmax.f32 %v529_v18, 0.0 }
 0x118   :  { %v523_v42 = vadd.f32 %v521_v44, %v509_v36 }
 0x119   :  { %533 = vrot.lane.b32.xlu0 %v531_v45, %s1174_s12  ;;  %v611_v43 = vrot.slane %v531_v45, %v1241_v4  ;;  %v623_v10 = vrot.slane %v531_v45, %v1244_v5  ;;  %v637_v52 = vrot.slane %v531_v45, %v1257_v12  ;;  %v651_v56 = vrot.slane %v531_v45, %v1263_v15 }
 0x11a   :  { %v527_v38 = vadd.f32 %v525_v46, %v523_v42  ;;  %v665_v61 = vrot.slane %v531_v45, %v1348_v54 }
 0x11b   :  { %v616_v50 = vmul.f32 %v1116_v39, %v611_v43  ;;  %v628_v51 = vmul.f32 %v1117_v48, %v623_v10  ;;  %v642_v60 = vmul.f32 %v1118_v53, %v637_v52  ;;  %v656_v20 = vmul.f32 %v1119_v57, %v651_v56 }
 0x11c   :  { %v530_v31 = vadd.f32 %v528_v29, %v527_v38  ;;  %v670_v63 = vmul.f32 %v1539_v41, %v665_v61  ;;  %v1123_v38 = vld [vmem:[%s1797_s5 + $0x60] sm:$0x7f] }
 0x11d   :  { %674 = vrot.lane.b32.xlu0 %v531_v45, %s1173_s11  ;;  %v630_v55 = vadd.f32 %v628_v51, %v616_v50 }
 0x11e   :  { %v1513_v47 = vmax.f32 %v530_v31, 0.0 }
 0x11f   :  { %v644_v3 = vadd.f32 %v642_v60, %v630_v55  ;;  %v1124_v55 = vld [vmem:[%s1797_s5 + $0x68] sm:$0x7f] }
 0x120   :  { %535 = vrot.lane.b32.xlu1 %v1513_v47, %s1174_s12  ;;  %v615_v0 = vrot.slane %v1513_v47, %v1241_v4  ;;  %v627_v6 = vrot.slane %v1513_v47, %v1244_v5  ;;  %v641_v21 = vrot.slane %v1513_v47, %v1257_v12  ;;  %v655_v17 = vrot.slane %v1513_v47, %v1263_v15 }
 0x121   :  { %v658_v28 = vadd.f32 %v656_v20, %v644_v3  ;;  %v669_v19 = vrot.slane %v1513_v47, %v1348_v54 }
 0x122   :  { %v617_v25 = vmul.f32 %v1116_v39, %v615_v0  ;;  %v629_v16 = vmul.f32 %v1117_v48, %v627_v6  ;;  %v643_v32 = vmul.f32 %v1118_v53, %v641_v21  ;;  %v657_v42 = vmul.f32 %v1119_v57, %v655_v17 }
 0x123   :  { %v672_v0 = vadd.f32 %v670_v63, %v658_v28 }
 0x124   :  { %676 = vrot.lane.b32.xlu1 %v1513_v47, %s1173_s11  ;;  %v631_v46 = vadd.f32 %v629_v16, %v617_v25 }
 0x18b   :  { %v534_v7 = vpop.permute.xlu0 %533 }
 0x18c   :  { %v537_v14 = vsel %vm35_vm1, %v534_v7, 0.0 }
 0x18d   :  { %v543_v40 = vrot.slane %v537_v14, %v1241_v4  ;;  %v555_v23 = vrot.slane %v537_v14, %v1244_v5  ;;  %v569_v62 = vrot.slane %v537_v14, %v1257_v12  ;;  %v583_v24 = vrot.slane %v537_v14, %v1263_v15 }
 0x18e   :  { %v597_v30 = vrot.slane %v537_v14, %v1348_v54  ;;  %v1125_v14 = vld [vmem:[%s1797_s5 + $0x70] sm:$0x7f] }
 0x18f   :  { %v548_v26 = vmul.f32 %v543_v40, %v539_v1  ;;  %v560_v2 = vmul.f32 %v1112_v11, %v555_v23  ;;  %v675_v29 = vpop.permute.xlu0 %674  ;;  %v574_v8 = vmul.f32 %v1113_v22, %v569_v62  ;;  %v588_v44 = vmul.f32 %v1114_v49, %v583_v24 }
 0x190   :  { %v678_v27 = vsel %vm36_vm0, %v675_v29, 0.0  ;;  %v602_v50 = vmul.f32 %v1115_v33, %v597_v30  ;;  %v645_v40 = vadd.f32 %v643_v32, %v631_v46 }
 0x191   :  { %v562_v34 = vadd.f32 %v560_v2, %v548_v26  ;;  %v685_v18 = vrot.slane %v678_v27, %v1241_v4  ;;  %v697_v37 = vrot.slane %v678_v27, %v1244_v5  ;;  %v711_v36 = vrot.slane %v678_v27, %v1257_v12 }
 0x192   :  { %v536_v45 = vpop.permute.xlu1 %535  ;;  %v725_v31 = vrot.slane %v678_v27, %v1263_v15  ;;  %v739_v61 = vrot.slane %v678_v27, %v1348_v54 }
 0x193   :  { %v576_v43 = vadd.f32 %v574_v8, %v562_v34  ;;  %v538_v10 = vsel %vm35_vm1, %v536_v45, 0.0  ;;  %v690_v39 = vmul.f32 %v1121_v9, %v685_v18  ;;  %v702_v48 = vmul.f32 %v1122_v35, %v697_v37 }
 0x194   :  { %v547_v51 = vrot.slane %v538_v10, %v1241_v4  ;;  %v559_v52 = vrot.slane %v538_v10, %v1244_v5  ;;  %v573_v53 = vrot.slane %v538_v10, %v1257_v12  ;;  %v716_v60 = vmul.f32 %v1123_v38, %v711_v36  ;;  %v752_v36 = vld [vmem:[%s1798_s6] sm:$0x7f] }
 0x195   :  { %v590_v56 = vadd.f32 %v588_v44, %v576_v43  ;;  %v704_v57 = vadd.f32 %v702_v48, %v690_v39  ;;  %v587_v3 = vrot.slane %v538_v10, %v1263_v15  ;;  %v730_v62 = vmul.f32 %v1124_v55, %v725_v31 }
 0x196   :  { %v549_v6 = vmul.f32 %v547_v51, %v539_v1  ;;  %v561_v7 = vmul.f32 %v1112_v11, %v559_v52  ;;  %v677_v20 = vpop.permute.xlu1 %676  ;;  %v575_v25 = vmul.f32 %v1113_v22, %v573_v53  ;;  %v601_v16 = vrot.slane %v538_v10, %v1348_v54 }
 0x197   :  { %v604_v21 = vadd.f32 %v602_v50, %v590_v56  ;;  %v718_v23 = vadd.f32 %v716_v60, %v704_v57  ;;  %v679_v63 = vsel %vm36_vm0, %v677_v20, 0.0  ;;  %v744_v11 = vmul.f32 %v1125_v14, %v739_v61 }
 0x198   :  { %v563_v24 = vadd.f32 %v561_v7, %v549_v6  ;;  %v689_v17 = vrot.slane %v679_v63, %v1241_v4  ;;  %v701_v26 = vrot.slane %v679_v63, %v1244_v5  ;;  %v589_v29 = vmul.f32 %v1114_v49, %v587_v3  ;;  %v1134_v6 = vld [vmem:[%s1799_s7 + $0x24] sm:$0xf] }
 0x199   :  { %v732_v1 = vadd.f32 %v730_v62, %v718_v23  ;;  %v748_v2 = vadd.f32 %v672_v0, %v604_v21  ;;  %v715_v8 = vrot.slane %v679_v63, %v1257_v12  ;;  %v729_v22 = vrot.slane %v679_v63, %v1263_v15  ;;  %v1135_v23 = vld [vmem:[%s1799_s7 + $0x28] sm:$0xf] }
 0x19a   :  { %v577_v28 = vadd.f32 %v575_v25, %v563_v24  ;;  %v691_v32 = vmul.f32 %v1121_v9, %v689_v17  ;;  %v703_v27 = vmul.f32 %v1122_v35, %v701_v26  ;;  %v603_v18 = vmul.f32 %v1115_v33, %v601_v16 }
 0x19b   :  { %v746_v30 = vadd.f32 %v744_v11, %v732_v1  ;;  %v659_v37 = vadd.f32 %v657_v42, %v645_v40  ;;  %v717_v46 = vmul.f32 %v1123_v38, %v715_v8  ;;  %v743_v31 = vrot.slane %v679_v63, %v1348_v54  ;;  %v1136_v11 = vld [vmem:[%s1799_s7 + $0x2c] sm:$0xf] }
 0x19c   :  { %v591_v34 = vadd.f32 %v589_v29, %v577_v28  ;;  %v705_v45 = vadd.f32 %v703_v27, %v691_v32  ;;  %v671_v49 = vmul.f32 %v1539_v41, %v669_v19  ;;  %v731_v10 = vmul.f32 %v1124_v55, %v729_v22  ;;  %v1132_v19 = vld [vmem:[%s1799_s7 + $0x1c] sm:$0xf]  ;;  %v1133_v55 = vld [vmem:[%s1799_s7 + $0x20] sm:$0xf]  ;;  %v1126_v27 = vld [vmem:[%s1799_s7 + $0x4] sm:$0xf] }
 0x19d   :  { %v750_v44 = vadd.f32 %v748_v2, %v746_v30  ;;  %v745_v48 = vmul.f32 %v1125_v14, %v743_v31  ;;  %v763_v28 = vld [vmem:[%s1799_s7] sm:$0xf]  ;;  %v1137_v30 = vld [vmem:[%s1799_s7 + $0x30] sm:$0xf]  ;;  %v1127_v31 = vld [vmem:[%s1799_s7 + $0x8] sm:$0xf] }
 0x19e   :  { %v605_v9 = vadd.f32 %v603_v18, %v591_v34  ;;  %v719_v43 = vadd.f32 %v717_v46, %v705_v45  ;;  %v673_v33 = vadd.f32 %v671_v49, %v659_v37 }
 0x19f   :  { %v753_v35 = vadd.f32 %v752_v36, %v750_v44 }
 0x1a0   :  { %v733_v39 = vadd.f32 %v731_v10, %v719_v43  ;;  %v749_v50 = vadd.f32 %v673_v33, %v605_v9 }
 0x1a1   :  { %v755_v42 = vmax.f32 %v753_v35, 0.0 }
 0x1a2   :  { %v747_v51 = vadd.f32 %v745_v48, %v733_v39  ;;  %v1128_v48 = vld [vmem:[%s1799_s7 + $0xc] sm:$0xf] }
 0x1a3   :  { %757 = vrot.lane.b32.xlu0 %v755_v42, %s1174_s12  ;;  %v863_v47 = vrot.slane %v755_v42, %v1241_v4  ;;  %v875_v41 = vrot.slane %v755_v42, %v1244_v5  ;;  %v889_v0 = vrot.slane %v755_v42, %v1257_v12  ;;  %v903_v40 = vrot.slane %v755_v42, %v1263_v15 }
 0x1a4   :  { %v751_v38 = vadd.f32 %v749_v50, %v747_v51  ;;  %v917_v25 = vrot.slane %v755_v42, %v1348_v54  ;;  %v931_v2 = vrot.slane %v755_v42, %v1355_v58  ;;  %v945_v32 = vrot.slane %v755_v42, %v1358_v59 }
 0x1a5   :  { %v868_v57 = vmul.f32 %v1132_v19, %v863_v47  ;;  %v880_v61 = vmul.f32 %v1133_v55, %v875_v41  ;;  %v894_v21 = vmul.f32 %v1134_v6, %v889_v0  ;;  %v908_v1 = vmul.f32 %v1135_v23, %v903_v40 }
 0x1a6   :  { %v754_v52 = vadd.f32 %v752_v36, %v751_v38  ;;  %v922_v8 = vmul.f32 %v1136_v11, %v917_v25  ;;  %v1673_v36 = vld [vmem:[%s1799_s7 + $0x34] sm:$0xf]  ;;  %v936_v35 = vmul.f32 %v1137_v30, %v931_v2  ;;  %v1141_v2 = vld [vmem:[%s1799_s7 + $0x40] sm:$0xf] }
 0x1a7   :  { %954 = vrot.lane.b32.xlu0 %v755_v42, %s1173_s11  ;;  %v882_v14 = vadd.f32 %v880_v61, %v868_v57  ;;  %v1683_v39 = vmul.f32 %v1673_v36, %v945_v32  ;;  %v1142_v32 = vld [vmem:[%s1799_s7 + $0x44] sm:$0xf] }
 0x1a8   :  { %v1619_v53 = vmax.f32 %v754_v52, 0.0 }
 0x1a9   :  { %v896_v24 = vadd.f32 %v894_v21, %v882_v14 }
 0x1aa   :  { %759 = vrot.lane.b32.xlu1 %v1619_v53, %s1174_s12  ;;  %v867_v56 = vrot.slane %v1619_v53, %v1241_v4  ;;  %v879_v60 = vrot.slane %v1619_v53, %v1244_v5  ;;  %v893_v20 = vrot.slane %v1619_v53, %v1257_v12  ;;  %v907_v63 = vrot.slane %v1619_v53, %v1263_v15 }
 0x1ab   :  { %v910_v26 = vadd.f32 %v908_v1, %v896_v24  ;;  %v921_v18 = vrot.slane %v1619_v53, %v1348_v54  ;;  %v935_v37 = vrot.slane %v1619_v53, %v1355_v58  ;;  %v949_v52 = vrot.slane %v1619_v53, %v1358_v59 }
 0x1ac   :  { %v869_v7 = vmul.f32 %v1132_v19, %v867_v56  ;;  %v881_v3 = vmul.f32 %v1133_v55, %v879_v60  ;;  %v895_v16 = vmul.f32 %v1134_v6, %v893_v20  ;;  %v909_v34 = vmul.f32 %v1135_v23, %v907_v63  ;;  %v1139_v19 = vld [vmem:[%s1799_s7 + $0x38] sm:$0xf]  ;;  %v1140_v55 = vld [vmem:[%s1799_s7 + $0x3c] sm:$0xf] }
 0x1ad   :  { %v924_v9 = vadd.f32 %v922_v8, %v910_v26  ;;  %v923_v51 = vmul.f32 %v1136_v11, %v921_v18  ;;  %v1692_v38 = vmul.f32 %v1137_v30, %v935_v37 }
 0x1ae   :  { %956 = vrot.lane.b32.xlu1 %v1619_v53, %s1173_s11  ;;  %v883_v62 = vadd.f32 %v881_v3, %v869_v7  ;;  %v1129_v7 = vld [vmem:[%s1799_s7 + $0x10] sm:$0xf]  ;;  %v1130_v3 = vld [vmem:[%s1799_s7 + $0x14] sm:$0xf] }
 0x1af   :  { %v1710_v6 = vadd.f32 %v936_v35, %v924_v9 }
 0x1b0   :  { %v897_v17 = vadd.f32 %v895_v16, %v883_v62  ;;  %v1724_v62 = vld [vmem:[%s1799_s7 + $0x18] sm:$0xf] }
 0x1b2   :  { %v911_v49 = vadd.f32 %v909_v34, %v897_v17 }
 0x1b4   :  { %v1708_v0 = vadd.f32 %v923_v51, %v911_v49 }
 0x215   :  { %v758_v29 = vpop.permute.xlu0 %757 }
 0x216   :  { %v761_v22 = vsel %vm35_vm1, %v758_v29, 0.0 }
 0x217   :  { %v767_v44 = vrot.slane %v761_v22, %v1241_v4  ;;  %v779_v45 = vrot.slane %v761_v22, %v1244_v5  ;;  %v793_v46 = vrot.slane %v761_v22, %v1257_v12  ;;  %v807_v33 = vrot.slane %v761_v22, %v1263_v15 }
 0x218   :  { %v821_v60 = vrot.slane %v761_v22, %v1348_v54  ;;  %v835_v61 = vrot.slane %v761_v22, %v1355_v58  ;;  %v849_v21 = vrot.slane %v761_v22, %v1358_v59 }
 0x219   :  { %v772_v43 = vmul.f32 %v767_v44, %v763_v28  ;;  %v784_v10 = vmul.f32 %v1126_v27, %v779_v45  ;;  %v955_v42 = vpop.permute.xlu0 %954  ;;  %v798_v41 = vmul.f32 %v1127_v31, %v793_v46  ;;  %v812_v20 = vmul.f32 %v1128_v48, %v807_v33  ;;  %v1143_v44 = vld [vmem:[%s1799_s7 + $0x48] sm:$0xf] }
 0x21a   :  { %v1690_v50 = vsel %vm36_vm0, %v955_v42, 0.0  ;;  %v826_v29 = vmul.f32 %v1129_v7, %v821_v60  ;;  %v840_v8 = vmul.f32 %v1130_v3, %v835_v61  ;;  %v854_v34 = vmul.f32 %v1724_v62, %v849_v21 }
 0x21b   :  { %v786_v47 = vadd.f32 %v784_v10, %v772_v43  ;;  %v965_v56 = vrot.slane %v1690_v50, %v1241_v4  ;;  %v977_v57 = vrot.slane %v1690_v50, %v1244_v5  ;;  %v991_v23 = vrot.slane %v1690_v50, %v1257_v12 }
 0x21c   :  { %v760_v40 = vpop.permute.xlu1 %759  ;;  %v1005_v63 = vrot.slane %v1690_v50, %v1263_v15  ;;  %v1019_v22 = vrot.slane %v1690_v50, %v1348_v54  ;;  %v1033_v45 = vrot.slane %v1690_v50, %v1355_v58  ;;  %v1047_v43 = vrot.slane %v1690_v50, %v1358_v59 }
 0x21d   :  { %v800_v14 = vadd.f32 %v798_v41, %v786_v47  ;;  %v1728_v24 = vsel %vm35_vm1, %v760_v40, 0.0  ;;  %v970_v25 = vmul.f32 %v1139_v19, %v965_v56  ;;  %v982_v16 = vmul.f32 %v1140_v55, %v977_v57  ;;  %v1144_v57 = vld [vmem:[%s1799_s7 + $0x4c] sm:$0xf] }
 0x21e   :  { %v771_v11 = vrot.slane %v1728_v24, %v1241_v4  ;;  %v783_v17 = vrot.slane %v1728_v24, %v1244_v5  ;;  %v797_v26 = vrot.slane %v1728_v24, %v1257_v12  ;;  %v811_v30 = vrot.slane %v1728_v24, %v1263_v15 }
 0x21f   :  { %v814_v1 = vadd.f32 %v812_v20, %v800_v14  ;;  %v825_v9 = vrot.slane %v1728_v24, %v1348_v54  ;;  %v996_v35 = vmul.f32 %v1141_v2, %v991_v23  ;;  %v839_v51 = vrot.slane %v1728_v24, %v1355_v58 }
 0x220   :  { %v773_v18 = vmul.f32 %v771_v11, %v763_v28  ;;  %v785_v37 = vmul.f32 %v1126_v27, %v783_v17  ;;  %v957_v46 = vpop.permute.xlu1 %956  ;;  %v799_v33 = vmul.f32 %v1127_v31, %v797_v26  ;;  %v984_v28 = vadd.f32 %v982_v16, %v970_v25 }
 0x221   :  { %v828_v49 = vadd.f32 %v826_v29, %v814_v1  ;;  %v1010_v27 = vmul.f32 %v1142_v32, %v1005_v63  ;;  %v813_v42 = vmul.f32 %v1128_v48, %v811_v30  ;;  %v1024_v47 = vmul.f32 %v1143_v44, %v1019_v22 }
 0x222   :  { %v787_v10 = vadd.f32 %v785_v37, %v773_v18  ;;  %v959_v41 = vsel %vm36_vm0, %v957_v46, 0.0  ;;  %v998_v60 = vadd.f32 %v996_v35, %v984_v28  ;;  %v827_v14 = vmul.f32 %v1129_v7, %v825_v9 }
 0x223   :  { %v969_v50 = vrot.slane %v959_v41, %v1241_v4  ;;  %v981_v31 = vrot.slane %v959_v41, %v1244_v5  ;;  %v842_v61 = vadd.f32 %v840_v8, %v828_v49  ;;  %v995_v48 = vrot.slane %v959_v41, %v1257_v12 }
 0x224   :  { %v801_v56 = vadd.f32 %v799_v33, %v787_v10  ;;  %v1009_v20 = vrot.slane %v959_v41, %v1263_v15  ;;  %v1012_v40 = vadd.f32 %v1010_v27, %v998_v60  ;;  %v841_v16 = vmul.f32 %v1130_v3, %v839_v51 }
 0x225   :  { %v971_v23 = vmul.f32 %v1139_v19, %v969_v50  ;;  %v983_v25 = vmul.f32 %v1140_v55, %v981_v31  ;;  %v853_v4 = vrot.slane %v1728_v24, %v1358_v59  ;;  %v1038_v63 = vmul.f32 %v1144_v57, %v1033_v45 }
 0x226   :  { %v815_v21 = vadd.f32 %v813_v42, %v801_v56  ;;  %v1023_v5 = vrot.slane %v959_v41, %v1348_v54  ;;  %v1026_v1 = vadd.f32 %v1024_v47, %v1012_v40  ;;  %v997_v11 = vmul.f32 %v1141_v2, %v995_v48 }
 0x227   :  { %v985_v12 = vadd.f32 %v983_v25, %v971_v23  ;;  %v1052_v15 = vmul.f32 %v1145_v13, %v1047_v43  ;;  %v1037_v17 = vrot.slane %v959_v41, %v1355_v58  ;;  %v856_v26 = vadd.f32 %v854_v34, %v842_v61 }
 0x228   :  { %v829_v7 = vadd.f32 %v827_v14, %v815_v21  ;;  %v952_v29 = vadd.f32 %v1683_v39, %v1710_v6  ;;  %v1011_v3 = vmul.f32 %v1142_v32, %v1009_v20  ;;  %v1040_v8 = vadd.f32 %v1038_v63, %v1026_v1  ;;  %v1060_v39 = vld [vmem:[%s1800_s8] sm:$0xf] }
 0x229   :  { %v999_v55 = vadd.f32 %v997_v11, %v985_v12  ;;  %v855_v24 = vmul.f32 %v1724_v62, %v853_v4  ;;  %v1025_v30 = vmul.f32 %v1143_v44, %v1023_v5  ;;  %v939_v54 = vadd.f32 %v1692_v38, %v1708_v0 }
 0x22a   :  { %v843_v19 = vadd.f32 %v841_v16, %v829_v7  ;;  %v1051_v2 = vrot.slane %v959_v41, %v1358_v59  ;;  %v1054_v18 = vadd.f32 %v1052_v15, %v1040_v8  ;;  %v1056_v37 = vadd.f32 %v952_v29, %v856_v26 }
 0x22b   :  { %v1013_v22 = vadd.f32 %v1011_v3, %v999_v55  ;;  %v951_v58 = vmul.f32 %v1673_v36, %v949_v52  ;;  %v1039_v62 = vmul.f32 %v1144_v57, %v1037_v17 }
 0x22c   :  { %v857_v32 = vadd.f32 %v855_v24, %v843_v19  ;;  %v1058_v34 = vadd.f32 %v1056_v37, %v1054_v18  ;;  %v1053_v44 = vmul.f32 %v1145_v13, %v1051_v2 }
 0x22d   :  { %v1027_v6 = vadd.f32 %v1025_v30, %v1013_v22  ;;  %v953_v38 = vadd.f32 %v951_v58, %v939_v54 }
 0x22e   :  { %v1061_v45 = vadd.f32 %v1060_v39, %v1058_v34 }
 0x22f   :  { %v1041_v0 = vadd.f32 %v1039_v62, %v1027_v6  ;;  %v1057_v49 = vadd.f32 %v953_v38, %v857_v32 }
 0x230   :  { %1063 = vst [vmem:[#allocation2] sm:$0xf] %v1061_v45 }
 0x231   :  { %v1055_v46 = vadd.f32 %v1053_v44, %v1041_v0 }
 0x233   :  { %v1059_v59 = vadd.f32 %v1057_v49, %v1055_v46 }
 0x235   :  { %v1062_v53 = vadd.f32 %v1060_v39, %v1059_v59 }
 0x237   :  { %1064 = vst [vmem:[#allocation2 + $0x4] sm:$0xf] %v1062_v53 }
 0x238   :  { %1162 = shalt.err (!%p1159_p4)
}
 0x239   :  { %s1176_s8 = smov 64   ;;  %s1177_s3 = smov 4  }
 0x23a   :  { %1076 = dma.vmem_to_hbm [thread:$0]  %s1071_s16, 128, %s1801_s9, [#allocation3], %s1176_s8, %s1176_s8, %s1177_s3  }
 0x23b   :  { %1171 = dma.done.wait [#allocation3], 128  }
 0x23c   :  { %1172 = vsyncadd [#allocation3], 4294967168 }
 0x23d   :  { %1080 = vsyncpa [#allocation3], 1 }

</bundles_post_ra>
